<compile_context>
chip_gen: v7x
topology: tpu7x:2x2x1
jax: 0.10.0
libtpu: 0.0.40
codegen_flags: <defaults>
</compile_context>

<pallas_src>
import functools

import jax
import jax.numpy as jnp
from jax import lax
from jax.experimental import pallas as pl
from jax.experimental.pallas import tpu as pltpu


# ----------------------------- fused Pallas kernel -----------------------------

def _fused_conv_morph_kernel(x_ref, wc_ref, b_ref, ewf_ref, wmax_ref, vc_ref, vm_ref, sgn_ref,
                             o_ref, xp_ref, e_ref, *, W, HW, Cin_p, Cout, kd, beta):
    """One image per grid step; channel-major layout (tokens on the 128-lane axis).

    x_ref    : (1, Cin_p, HW)         input image, channels zero-padded to Cin_p
    wc_ref   : (2*Cout, 9*Cin_p)      fused conv weight (rows [:Cout]=dilation, [Cout:]=erosion)
    b_ref    : (2*Cout, 1)            fused conv bias
    ewf_ref  : (2*Cout, kd*kd*2*Cout) flattened block-diagonal exp(beta*(w_morph - wmax_row))
    wmax_ref : (2*Cout, 1)            per-output-row max of the morphology weights
    vc_ref   : (9, 1, HW)             conv border-validity masks (zero padding)
    vm_ref   : (kd*kd, 1, HW)         morphology border-validity masks (zero padding)
    sgn_ref  : (2*Cout, 1)            +1 on dilation rows, -1 on erosion rows
    o_ref    : (1, 2*Cout, HW)        output, NCHW-flattened (lane dense)
    xp_ref   : VMEM (9*Cin_p, HW)     scratch: in-kernel conv im2col patches
    e_ref    : VMEM (kd*kd*2C, HW)    scratch: signed neighbours, then their exp
    """
    C2 = 2 * Cout
    rd = kd // 2
    x = x_ref[0]                                             # (Cin_p, HW)

    # ---- conv im2col built in-register: 9 lane rolls + border masks (== zero padding) ----
    off_c = [(dh, dw) for dh in range(-1, 2) for dw in range(-1, 2)]   # kc == 3, pad == 1
    for idx, (dh, dw) in enumerate(off_c):
        s = dh * W + dw
        v = x if s == 0 else pltpu.roll(x, shift=(-s) % HW, axis=1)
        xp_ref[idx * Cin_p:(idx + 1) * Cin_p, :] = v * vc_ref[idx]

    # ---- both branches' Conv2d as ONE MXU matmul (+ bias), K = 9*Cin_p ----
    y = jnp.dot(wc_ref[...], xp_ref[...], preferred_element_type=jnp.float32) + b_ref[...]
    sgn = sgn_ref[...]                                       # (2C, 1)
    y_s = y * sgn                                            # erosion rows negated exactly once

    # ---- morphology neighbourhood: each rolled+masked neighbour computed exactly ONCE,
    #      stashed in VMEM so the max pass and the exp pass share it ----
    off_m = [(dh, dw) for dh in range(-rd, rd + 1) for dw in range(-rd, rd + 1)]
    m = None
    for idx, (dh, dw) in enumerate(off_m):
        s = dh * W + dw
        v = y_s if s == 0 else pltpu.roll(y_s, shift=(-s) % HW, axis=1)
        v = v * vm_ref[idx]
        e_ref[idx * C2:(idx + 1) * C2, :] = v
        m = v if m is None else jnp.maximum(m, v)

    # per-group (dilation / erosion) per-token shift for the stable logsumexp
    m_dia = jnp.max(m[:Cout, :], axis=0, keepdims=True)      # (1, HW)
    m_ero = jnp.max(m[Cout:, :], axis=0, keepdims=True)      # (1, HW)
    dmask = (sgn + 1.0) * 0.5                                # 1 on dilation rows, 0 on erosion
    m_b = dmask * m_dia + (1.0 - dmask) * m_ero              # (2C, HW)

    # ---- exp once per patch element, then the whole (offset, channel) reduction as ONE
    #      MXU matmul with K = kd*kd*2*Cout against the block-diagonal exp(beta*(w-wmax)) ----
    for idx in range(len(off_m)):
        blk = e_ref[idx * C2:(idx + 1) * C2, :]
        e_ref[idx * C2:(idx + 1) * C2, :] = jnp.exp(beta * (blk - m_b))
    acc = jnp.dot(ewf_ref[...], e_ref[...], preferred_element_type=jnp.float32)

    # add shifts back; dilation rows kept, erosion rows negated; floor avoids log(0) = -inf
    out = (jnp.log(jnp.maximum(acc, 1e-30)) / beta + m_b + wmax_ref[...]) * sgn
    o_ref[0] = out.astype(o_ref.dtype)


# ----------------------------- one-time builder (all constant prep hoisted) -----------------------------

def build_conv_erosion_dilation_block(params, *, kernel_size_conv, kernel_size_diaero,
                                      image_hw, beta=20.0):
    kc, kd = kernel_size_conv, kernel_size_diaero
    assert kc == 3, "in-kernel im2col assumes Conv2d(kernel=3, stride=1, padding=1) ('same' conv)"
    assert kd % 2 == 1, "soft morphology assumes an odd kernel ('same' padding)"
    H, W = image_hw
    HW = H * W
    Cout, Cin = params["conv_w_dia"].shape[:2]
    C2 = 2 * Cout
    Cin_p = ((Cin + 7) // 8) * 8          # pad channels to a sublane-aligned count
    rd = kd // 2
    nk = kd * kd
    f32 = jnp.float32

    # --- fused conv weight / bias: dilation rows first, erosion rows second ---
    def conv_rows(w):                      # (Cout, Cin, 3, 3) -> (Cout, 9*Cin_p), order (kh, kw, cin)
        wt = jnp.transpose(w.astype(f32), (0, 2, 3, 1))
        wt = jnp.pad(wt, ((0, 0), (0, 0), (0, 0), (0, Cin_p - Cin)))
        return wt.reshape(Cout, kc * kc * Cin_p)

    wc = jnp.concatenate([conv_rows(params["conv_w_dia"]),
                          conv_rows(params["conv_w_ero"])], axis=0)
    bc = jnp.concatenate([params["conv_b_dia"],
                          params["conv_b_ero"]]).reshape(C2, 1).astype(f32)

    # --- morphology weights: per-row max shift (overflow-safe), block-diagonal, flattened so the
    #     whole (offset, channel) reduction is a single MXU matmul of K = kd*kd*2*Cout ---
    def morph_prep(w):                     # (Cout, Cout, kd, kd)
        w = w.astype(f32)
        wmax = jnp.max(w.reshape(Cout, -1), axis=1, keepdims=True)          # (Cout, 1)
        wt = jnp.transpose(w, (2, 3, 0, 1)).reshape(nk, Cout, Cout)         # [offset, cout, cin]
        return jnp.exp(beta * (wt - wmax[None, :, :])), wmax

    ed, wmax_d = morph_prep(params["morph_w_dia"])
    ee, wmax_e = morph_prep(params["morph_w_ero"])
    z = jnp.zeros_like(ed)
    ew = jnp.concatenate([jnp.concatenate([ed, z], axis=2),
                          jnp.concatenate([z, ee], axis=2)], axis=1)        # (nk, 2C, 2C)
    ewf = jnp.transpose(ew, (1, 0, 2)).reshape(C2, nk * C2)                 # (2C, nk*2C)
    wmax = jnp.concatenate([wmax_d, wmax_e], axis=0)                        # (2C, 1)

    # --- border-validity masks (encode the conv's and the morphology's zero padding) ---
    def masks(r):
        hh, ww = jnp.meshgrid(jnp.arange(H), jnp.arange(W), indexing="ij")
        ms = []
        for dh in range(-r, r + 1):
            for dw in range(-r, r + 1):
                ok = (hh + dh >= 0) & (hh + dh < H) & (ww + dw >= 0) & (ww + dw < W)
                ms.append(ok.reshape(1, HW))
        return jnp.stack(ms, axis=0).astype(f32)

    valid_c = masks(1)                                     # (9, 1, HW)
    valid_m = valid_c if kd == kc else masks(rd)           # (kd*kd, 1, HW)
    sgn = jnp.concatenate([jnp.ones((Cout, 1), f32),
                           -jnp.ones((Cout, 1), f32)], axis=0)

    kern = functools.partial(_fused_conv_morph_kernel, W=W, HW=HW, Cin_p=Cin_p,
                             Cout=Cout, kd=kd, beta=float(beta))

    @jax.jit
    def forward(x_nchw):
        B = x_nchw.shape[0]
        assert x_nchw.shape[1:] == (Cin, H, W), x_nchw.shape
        x = jnp.pad(x_nchw.astype(f32),
                    ((0, 0), (0, Cin_p - Cin), (0, 0), (0, 0))).reshape(B, Cin_p, HW)
        out = pl.pallas_call(
            kern,
            out_shape=jax.ShapeDtypeStruct((B, C2, HW), f32),
            grid=(B,),
            in_specs=[
                pl.BlockSpec((1, Cin_p, HW), lambda b: (b, 0, 0)),
                pl.BlockSpec((C2, kc * kc * Cin_p), lambda b: (0, 0)),
                pl.BlockSpec((C2, 1), lambda b: (0, 0)),
                pl.BlockSpec((C2, nk * C2), lambda b: (0, 0)),
                pl.BlockSpec((C2, 1), lambda b: (0, 0)),
                pl.BlockSpec((kc * kc, 1, HW), lambda b: (0, 0, 0)),
                pl.BlockSpec((nk, 1, HW), lambda b: (0, 0, 0)),
                pl.BlockSpec((C2, 1), lambda b: (0, 0)),
            ],
            out_specs=pl.BlockSpec((1, C2, HW), lambda b: (b, 0, 0)),
            scratch_shapes=[
                pltpu.VMEM((kc * kc * Cin_p, HW), f32),    # in-kernel conv im2col patches
                pltpu.VMEM((nk * C2, HW), f32),            # stacked signed / exp'd neighbours
            ],
            compiler_params=pltpu.CompilerParams(
                dimension_semantics=("parallel",),         # >=2 steps keeps both v7x TCs busy
                vmem_limit_bytes=32 * 1024 * 1024,
            ),
        )(x, wc, bc, ewf, wmax, valid_c, valid_m, sgn)
        return out.reshape(B, C2, H, W)                    # already channel-major == NCHW

    return forward


# ----------------------------- pure-JAX reference -----------------------------

def _reference(x, params, kc, kd, beta):
    def conv(xx, w, b):
        out = lax.conv_general_dilated(
            xx, w, window_strides=(1, 1), padding=((1, 1), (1, 1)),
            dimension_numbers=("NCHW", "OIHW", "NCHW"),
            precision=lax.Precision.HIGHEST)
        return out + b[None, :, None, None]

    def morph(y, w, erosion):
        B, C, H, W = y.shape
        pad = kd // 2
        yp = jnp.pad(y, ((0, 0), (0, 0), (pad, pad), (pad, pad)))
        patches = []
        for c in range(C):                      # torch.nn.Unfold ordering (c, kh, kw)
            for i in range(kd):
                for j in range(kd):
                    patches.append(yp[:, c, i:i + H, j:j + W].reshape(B, H * W))
        p = jnp.stack(patches, axis=1)          # (B, C*kd*kd, L)
        wf = w.reshape(C, -1)                   # (Cout, Cin*kd*kd)
        s = wf[None, :, :, None] + (-p if erosion else p)[:, None, :, :]
        out = jax.scipy.special.logsumexp(beta * s, axis=2) / beta
        if erosion:
            out = -out
        return out.reshape(B, C, H, W)

    dia = morph(conv(x, params["conv_w_dia"], params["conv_b_dia"]), params["morph_w_dia"], False)
    ero = morph(conv(x, params["conv_w_ero"], params["conv_b_ero"]), params["morph_w_ero"], True)
    return jnp.concatenate([dia, ero], axis=1)


# ----------------------------- main -----------------------------

if __name__ == "__main__":
    B, dim, H, W = 2, 4, 16, 16
    output_dim, kc, kd = 8, 3, 3
    beta = 20.0

    key = jax.random.PRNGKey(0)
    ks = jax.random.split(key, 7)
    x = jax.random.normal(ks[0], (B, dim, H, W), jnp.float32)

    # Deterministic synthetic parameters (PyTorch shapes):
    #   Conv2d weight (Cout, Cin, kc, kc), bias (Cout,)
    #   Morphology weight (Cout, Cin=Cout, kd, kd)
    params = {
        "conv_w_dia": 0.10 * jax.random.normal(ks[1], (output_dim, dim, kc, kc), jnp.float32),
        "conv_b_dia": 0.10 * jax.random.normal(ks[2], (output_dim,), jnp.float32),
        "morph_w_dia": 0.05 * jax.random.normal(ks[3], (output_dim, output_dim, kd, kd), jnp.float32),
        "conv_w_ero": 0.10 * jax.random.normal(ks[4], (output_dim, dim, kc, kc), jnp.float32),
        "conv_b_ero": 0.10 * jax.random.normal(ks[5], (output_dim,), jnp.float32),
        "morph_w_ero": 0.05 * jax.random.normal(ks[6], (output_dim, output_dim, kd, kd), jnp.float32),
    }

    # constant preprocessing runs once here, outside the per-call forward path
    fwd = build_conv_erosion_dilation_block(
        params, kernel_size_conv=kc, kernel_size_diaero=kd, image_hw=(H, W), beta=beta)

    out = jax.block_until_ready(fwd(x))
    assert out.shape == (B, 2 * output_dim, H, W), out.shape

    ref = _reference(x, params, kc, kd, beta)
    max_err = float(jnp.max(jnp.abs(out - ref)))
    assert jnp.allclose(out, ref, atol=1e-3, rtol=1e-3), max_err

    print("KERNEL_OK")
</pallas_src>

<mosaic_0001>
module attributes {stable_mosaic.version = 11 : i64} {
  func.func @_fused_conv_morph_kernel(%arg0: i32, %arg1: memref<1x8x256xf32, #tpu.memory_space<vmem>>, %arg2: memref<16x72xf32, #tpu.memory_space<vmem>>, %arg3: memref<16x1xf32, #tpu.memory_space<vmem>>, %arg4: memref<16x144xf32, #tpu.memory_space<vmem>>, %arg5: memref<16x1xf32, #tpu.memory_space<vmem>>, %arg6: memref<9x1x256xf32, #tpu.memory_space<vmem>>, %arg7: memref<9x1x256xf32, #tpu.memory_space<vmem>>, %arg8: memref<16x1xf32, #tpu.memory_space<vmem>>, %arg9: memref<1x16x256xf32, #tpu.memory_space<vmem>>, %arg10: memref<72x256xf32, #tpu.memory_space<vmem>>, %arg11: memref<144x256xf32, #tpu.memory_space<vmem>>) attributes {dimension_semantics = [#tpu.dimension_semantics<parallel>], iteration_bounds = array<i64: 2>, scalar_prefetch = 0 : i64, scratch_operands = 2 : i64, tpu.core_type = #tpu.core_type<tc>, window_params = [{transform_indices = @transform_0, window_bounds = array<i64: 1, 8, 256>}, {pipeline_mode = #tpu.pipeline_mode<synchronous>, transform_indices = @transform_1, window_bounds = array<i64: 16, 72>}, {pipeline_mode = #tpu.pipeline_mode<synchronous>, transform_indices = @transform_2, window_bounds = array<i64: 16, 1>}, {pipeline_mode = #tpu.pipeline_mode<synchronous>, transform_indices = @transform_3, window_bounds = array<i64: 16, 144>}, {pipeline_mode = #tpu.pipeline_mode<synchronous>, transform_indices = @transform_4, window_bounds = array<i64: 16, 1>}, {pipeline_mode = #tpu.pipeline_mode<synchronous>, transform_indices = @transform_5, window_bounds = array<i64: 9, 1, 256>}, {pipeline_mode = #tpu.pipeline_mode<synchronous>, transform_indices = @transform_6, window_bounds = array<i64: 9, 1, 256>}, {pipeline_mode = #tpu.pipeline_mode<synchronous>, transform_indices = @transform_7, window_bounds = array<i64: 16, 1>}, {transform_indices = @transform_8, window_bounds = array<i64: 1, 16, 256>}]} {
    %c0 = arith.constant 0 : index
    %c0_0 = arith.constant 0 : index
    %c0_1 = arith.constant 0 : index
    %0 = vector.load %arg1[%c0, %c0_0, %c0_1] : memref<1x8x256xf32, #tpu.memory_space<vmem>>, vector<1x8x256xf32>
    %1 = vector.shape_cast %0 : vector<1x8x256xf32> to vector<8x256xf32>
    %c17_i32 = arith.constant 17 : i32
    %2 = tpu.dynamic_rotate %1 by %c17_i32 dim 1 : vector<8x256xf32>, i32 -> vector<8x256xf32>
    %c0_2 = arith.constant 0 : index
    %c0_3 = arith.constant 0 : index
    %c0_4 = arith.constant 0 : index
    %3 = vector.load %arg6[%c0_2, %c0_3, %c0_4] : memref<9x1x256xf32, #tpu.memory_space<vmem>>, vector<1x1x256xf32>
    %4 = vector.shape_cast %3 : vector<1x1x256xf32> to vector<1x256xf32>
    %5 = vector.broadcast %4 : vector<1x256xf32> to vector<8x256xf32>
    %6 = arith.mulf %2, %5 : vector<8x256xf32>
    %c0_5 = arith.constant 0 : index
    %c0_6 = arith.constant 0 : index
    %7 = vector.load %arg10[%c0_5, %c0_6] : memref<72x256xf32, #tpu.memory_space<vmem>>, vector<8x256xf32>
    tpu.vector_store %arg10[%c0_5, %c0_6], %6 {strides = array<i32>} : memref<72x256xf32, #tpu.memory_space<vmem>>, vector<8x256xf32>,
    %c16_i32 = arith.constant 16 : i32
    %8 = tpu.dynamic_rotate %1 by %c16_i32 dim 1 : vector<8x256xf32>, i32 -> vector<8x256xf32>
    %c1 = arith.constant 1 : index
    %c0_7 = arith.constant 0 : index
    %c0_8 = arith.constant 0 : index
    %9 = vector.load %arg6[%c1, %c0_7, %c0_8] : memref<9x1x256xf32, #tpu.memory_space<vmem>>, vector<1x1x256xf32>
    %10 = vector.shape_cast %9 : vector<1x1x256xf32> to vector<1x256xf32>
    %11 = vector.broadcast %10 : vector<1x256xf32> to vector<8x256xf32>
    %12 = arith.mulf %8, %11 : vector<8x256xf32>
    %c8 = arith.constant 8 : index
    %c0_9 = arith.constant 0 : index
    %13 = vector.load %arg10[%c8, %c0_9] : memref<72x256xf32, #tpu.memory_space<vmem>>, vector<8x256xf32>
    tpu.vector_store %arg10[%c8, %c0_9], %12 {strides = array<i32>} : memref<72x256xf32, #tpu.memory_space<vmem>>, vector<8x256xf32>,
    %c15_i32 = arith.constant 15 : i32
    %14 = tpu.dynamic_rotate %1 by %c15_i32 dim 1 : vector<8x256xf32>, i32 -> vector<8x256xf32>
    %c2 = arith.constant 2 : index
    %c0_10 = arith.constant 0 : index
    %c0_11 = arith.constant 0 : index
    %15 = vector.load %arg6[%c2, %c0_10, %c0_11] : memref<9x1x256xf32, #tpu.memory_space<vmem>>, vector<1x1x256xf32>
    %16 = vector.shape_cast %15 : vector<1x1x256xf32> to vector<1x256xf32>
    %17 = vector.broadcast %16 : vector<1x256xf32> to vector<8x256xf32>
    %18 = arith.mulf %14, %17 : vector<8x256xf32>
    %c16 = arith.constant 16 : index
    %c0_12 = arith.constant 0 : index
    %19 = vector.load %arg10[%c16, %c0_12] : memref<72x256xf32, #tpu.memory_space<vmem>>, vector<8x256xf32>
    tpu.vector_store %arg10[%c16, %c0_12], %18 {strides = array<i32>} : memref<72x256xf32, #tpu.memory_space<vmem>>, vector<8x256xf32>,
    %c1_i32 = arith.constant 1 : i32
    %20 = tpu.dynamic_rotate %1 by %c1_i32 dim 1 : vector<8x256xf32>, i32 -> vector<8x256xf32>
    %c3 = arith.constant 3 : index
    %c0_13 = arith.constant 0 : index
    %c0_14 = arith.constant 0 : index
    %21 = vector.load %arg6[%c3, %c0_13, %c0_14] : memref<9x1x256xf32, #tpu.memory_space<vmem>>, vector<1x1x256xf32>
    %22 = vector.shape_cast %21 : vector<1x1x256xf32> to vector<1x256xf32>
    %23 = vector.broadcast %22 : vector<1x256xf32> to vector<8x256xf32>
    %24 = arith.mulf %20, %23 : vector<8x256xf32>
    %c24 = arith.constant 24 : index
    %c0_15 = arith.constant 0 : index
    %25 = vector.load %arg10[%c24, %c0_15] : memref<72x256xf32, #tpu.memory_space<vmem>>, vector<8x256xf32>
    tpu.vector_store %arg10[%c24, %c0_15], %24 {strides = array<i32>} : memref<72x256xf32, #tpu.memory_space<vmem>>, vector<8x256xf32>,
    %c4 = arith.constant 4 : index
    %c0_16 = arith.constant 0 : index
    %c0_17 = arith.constant 0 : index
    %26 = vector.load %arg6[%c4, %c0_16, %c0_17] : memref<9x1x256xf32, #tpu.memory_space<vmem>>, vector<1x1x256xf32>
    %27 = vector.shape_cast %26 : vector<1x1x256xf32> to vector<1x256xf32>
    %28 = vector.broadcast %27 : vector<1x256xf32> to vector<8x256xf32>
    %29 = arith.mulf %1, %28 : vector<8x256xf32>
    %c32 = arith.constant 32 : index
    %c0_18 = arith.constant 0 : index
    %30 = vector.load %arg10[%c32, %c0_18] : memref<72x256xf32, #tpu.memory_space<vmem>>, vector<8x256xf32>
    tpu.vector_store %arg10[%c32, %c0_18], %29 {strides = array<i32>} : memref<72x256xf32, #tpu.memory_space<vmem>>, vector<8x256xf32>,
    %c255_i32 = arith.constant 255 : i32
    %31 = tpu.dynamic_rotate %1 by %c255_i32 dim 1 : vector<8x256xf32>, i32 -> vector<8x256xf32>
    %c5 = arith.constant 5 : index
    %c0_19 = arith.constant 0 : index
    %c0_20 = arith.constant 0 : index
    %32 = vector.load %arg6[%c5, %c0_19, %c0_20] : memref<9x1x256xf32, #tpu.memory_space<vmem>>, vector<1x1x256xf32>
    %33 = vector.shape_cast %32 : vector<1x1x256xf32> to vector<1x256xf32>
    %34 = vector.broadcast %33 : vector<1x256xf32> to vector<8x256xf32>
    %35 = arith.mulf %31, %34 : vector<8x256xf32>
    %c40 = arith.constant 40 : index
    %c0_21 = arith.constant 0 : index
    %36 = vector.load %arg10[%c40, %c0_21] : memref<72x256xf32, #tpu.memory_space<vmem>>, vector<8x256xf32>
    tpu.vector_store %arg10[%c40, %c0_21], %35 {strides = array<i32>} : memref<72x256xf32, #tpu.memory_space<vmem>>, vector<8x256xf32>,
    %c241_i32 = arith.constant 241 : i32
    %37 = tpu.dynamic_rotate %1 by %c241_i32 dim 1 : vector<8x256xf32>, i32 -> vector<8x256xf32>
    %c6 = arith.constant 6 : index
    %c0_22 = arith.constant 0 : index
    %c0_23 = arith.constant 0 : index
    %38 = vector.load %arg6[%c6, %c0_22, %c0_23] : memref<9x1x256xf32, #tpu.memory_space<vmem>>, vector<1x1x256xf32>
    %39 = vector.shape_cast %38 : vector<1x1x256xf32> to vector<1x256xf32>
    %40 = vector.broadcast %39 : vector<1x256xf32> to vector<8x256xf32>
    %41 = arith.mulf %37, %40 : vector<8x256xf32>
    %c48 = arith.constant 48 : index
    %c0_24 = arith.constant 0 : index
    %42 = vector.load %arg10[%c48, %c0_24] : memref<72x256xf32, #tpu.memory_space<vmem>>, vector<8x256xf32>
    tpu.vector_store %arg10[%c48, %c0_24], %41 {strides = array<i32>} : memref<72x256xf32, #tpu.memory_space<vmem>>, vector<8x256xf32>,
    %c240_i32 = arith.constant 240 : i32
    %43 = tpu.dynamic_rotate %1 by %c240_i32 dim 1 : vector<8x256xf32>, i32 -> vector<8x256xf32>
    %c7 = arith.constant 7 : index
    %c0_25 = arith.constant 0 : index
    %c0_26 = arith.constant 0 : index
    %44 = vector.load %arg6[%c7, %c0_25, %c0_26] : memref<9x1x256xf32, #tpu.memory_space<vmem>>, vector<1x1x256xf32>
    %45 = vector.shape_cast %44 : vector<1x1x256xf32> to vector<1x256xf32>
    %46 = vector.broadcast %45 : vector<1x256xf32> to vector<8x256xf32>
    %47 = arith.mulf %43, %46 : vector<8x256xf32>
    %c56 = arith.constant 56 : index
    %c0_27 = arith.constant 0 : index
    %48 = vector.load %arg10[%c56, %c0_27] : memref<72x256xf32, #tpu.memory_space<vmem>>, vector<8x256xf32>
    tpu.vector_store %arg10[%c56, %c0_27], %47 {strides = array<i32>} : memref<72x256xf32, #tpu.memory_space<vmem>>, vector<8x256xf32>,
    %c239_i32 = arith.constant 239 : i32
    %49 = tpu.dynamic_rotate %1 by %c239_i32 dim 1 : vector<8x256xf32>, i32 -> vector<8x256xf32>
    %c8_28 = arith.constant 8 : index
    %c0_29 = arith.constant 0 : index
    %c0_30 = arith.constant 0 : index
    %50 = vector.load %arg6[%c8_28, %c0_29, %c0_30] : memref<9x1x256xf32, #tpu.memory_space<vmem>>, vector<1x1x256xf32>
    %51 = vector.shape_cast %50 : vector<1x1x256xf32> to vector<1x256xf32>
    %52 = vector.broadcast %51 : vector<1x256xf32> to vector<8x256xf32>
    %53 = arith.mulf %49, %52 : vector<8x256xf32>
    %c64 = arith.constant 64 : index
    %c0_31 = arith.constant 0 : index
    %54 = vector.load %arg10[%c64, %c0_31] : memref<72x256xf32, #tpu.memory_space<vmem>>, vector<8x256xf32>
    tpu.vector_store %arg10[%c64, %c0_31], %53 {strides = array<i32>} : memref<72x256xf32, #tpu.memory_space<vmem>>, vector<8x256xf32>,
    %c0_32 = arith.constant 0 : index
    %c0_33 = arith.constant 0 : index
    %55 = vector.load %arg2[%c0_32, %c0_33] : memref<16x72xf32, #tpu.memory_space<vmem>>, vector<16x72xf32>
    %c0_34 = arith.constant 0 : index
    %c0_35 = arith.constant 0 : index
    %56 = vector.load %arg10[%c0_34, %c0_35] : memref<72x256xf32, #tpu.memory_space<vmem>>, vector<72x256xf32>
    %cst = arith.constant dense<0.000000e+00> : vector<16x256xf32>
    %57 = tpu.matmul %55, %56, %cst {dimension_numbers = #tpu.dot_dimension_numbers<[1], [0], [0], [1], [0, 0, 1, 1], [], []>} : vector<16x72xf32>, vector<72x256xf32>, vector<16x256xf32> -> vector<16x256xf32>
    %c0_36 = arith.constant 0 : index
    %c0_37 = arith.constant 0 : index
    %58 = vector.load %arg3[%c0_36, %c0_37] : memref<16x1xf32, #tpu.memory_space<vmem>>, vector<16x1xf32>
    %59 = vector.broadcast %58 : vector<16x1xf32> to vector<16x256xf32>
    %60 = arith.addf %57, %59 : vector<16x256xf32>
    %c0_38 = arith.constant 0 : index
    %c0_39 = arith.constant 0 : index
    %61 = vector.load %arg8[%c0_38, %c0_39] : memref<16x1xf32, #tpu.memory_space<vmem>>, vector<16x1xf32>
    %62 = vector.broadcast %61 : vector<16x1xf32> to vector<16x256xf32>
    %63 = arith.mulf %60, %62 : vector<16x256xf32>
    %c17_i32_40 = arith.constant 17 : i32
    %64 = tpu.dynamic_rotate %63 by %c17_i32_40 dim 1 : vector<16x256xf32>, i32 -> vector<16x256xf32>
    %c0_41 = arith.constant 0 : index
    %c0_42 = arith.constant 0 : index
    %c0_43 = arith.constant 0 : index
    %65 = vector.load %arg7[%c0_41, %c0_42, %c0_43] : memref<9x1x256xf32, #tpu.memory_space<vmem>>, vector<1x1x256xf32>
    %66 = vector.shape_cast %65 : vector<1x1x256xf32> to vector<1x256xf32>
    %67 = vector.broadcast %66 : vector<1x256xf32> to vector<16x256xf32>
    %68 = arith.mulf %64, %67 : vector<16x256xf32>
    %c0_44 = arith.constant 0 : index
    %c0_45 = arith.constant 0 : index
    %69 = vector.load %arg11[%c0_44, %c0_45] : memref<144x256xf32, #tpu.memory_space<vmem>>, vector<16x256xf32>
    tpu.vector_store %arg11[%c0_44, %c0_45], %68 {strides = array<i32>} : memref<144x256xf32, #tpu.memory_space<vmem>>, vector<16x256xf32>,
    %c16_i32_46 = arith.constant 16 : i32
    %70 = tpu.dynamic_rotate %63 by %c16_i32_46 dim 1 : vector<16x256xf32>, i32 -> vector<16x256xf32>
    %c1_47 = arith.constant 1 : index
    %c0_48 = arith.constant 0 : index
    %c0_49 = arith.constant 0 : index
    %71 = vector.load %arg7[%c1_47, %c0_48, %c0_49] : memref<9x1x256xf32, #tpu.memory_space<vmem>>, vector<1x1x256xf32>
    %72 = vector.shape_cast %71 : vector<1x1x256xf32> to vector<1x256xf32>
    %73 = vector.broadcast %72 : vector<1x256xf32> to vector<16x256xf32>
    %74 = arith.mulf %70, %73 : vector<16x256xf32>
    %c16_50 = arith.constant 16 : index
    %c0_51 = arith.constant 0 : index
    %75 = vector.load %arg11[%c16_50, %c0_51] : memref<144x256xf32, #tpu.memory_space<vmem>>, vector<16x256xf32>
    tpu.vector_store %arg11[%c16_50, %c0_51], %74 {strides = array<i32>} : memref<144x256xf32, #tpu.memory_space<vmem>>, vector<16x256xf32>,
    %76 = arith.maximumf %68, %74 : vector<16x256xf32>
    %c15_i32_52 = arith.constant 15 : i32
    %77 = tpu.dynamic_rotate %63 by %c15_i32_52 dim 1 : vector<16x256xf32>, i32 -> vector<16x256xf32>
    %c2_53 = arith.constant 2 : index
    %c0_54 = arith.constant 0 : index
    %c0_55 = arith.constant 0 : index
    %78 = vector.load %arg7[%c2_53, %c0_54, %c0_55] : memref<9x1x256xf32, #tpu.memory_space<vmem>>, vector<1x1x256xf32>
    %79 = vector.shape_cast %78 : vector<1x1x256xf32> to vector<1x256xf32>
    %80 = vector.broadcast %79 : vector<1x256xf32> to vector<16x256xf32>
    %81 = arith.mulf %77, %80 : vector<16x256xf32>
    %c32_56 = arith.constant 32 : index
    %c0_57 = arith.constant 0 : index
    %82 = vector.load %arg11[%c32_56, %c0_57] : memref<144x256xf32, #tpu.memory_space<vmem>>, vector<16x256xf32>
    tpu.vector_store %arg11[%c32_56, %c0_57], %81 {strides = array<i32>} : memref<144x256xf32, #tpu.memory_space<vmem>>, vector<16x256xf32>,
    %83 = arith.maximumf %76, %81 : vector<16x256xf32>
    %c1_i32_58 = arith.constant 1 : i32
    %84 = tpu.dynamic_rotate %63 by %c1_i32_58 dim 1 : vector<16x256xf32>, i32 -> vector<16x256xf32>
    %c3_59 = arith.constant 3 : index
    %c0_60 = arith.constant 0 : index
    %c0_61 = arith.constant 0 : index
    %85 = vector.load %arg7[%c3_59, %c0_60, %c0_61] : memref<9x1x256xf32, #tpu.memory_space<vmem>>, vector<1x1x256xf32>
    %86 = vector.shape_cast %85 : vector<1x1x256xf32> to vector<1x256xf32>
    %87 = vector.broadcast %86 : vector<1x256xf32> to vector<16x256xf32>
    %88 = arith.mulf %84, %87 : vector<16x256xf32>
    %c48_62 = arith.constant 48 : index
    %c0_63 = arith.constant 0 : index
    %89 = vector.load %arg11[%c48_62, %c0_63] : memref<144x256xf32, #tpu.memory_space<vmem>>, vector<16x256xf32>
    tpu.vector_store %arg11[%c48_62, %c0_63], %88 {strides = array<i32>} : memref<144x256xf32, #tpu.memory_space<vmem>>, vector<16x256xf32>,
    %90 = arith.maximumf %83, %88 : vector<16x256xf32>
    %c4_64 = arith.constant 4 : index
    %c0_65 = arith.constant 0 : index
    %c0_66 = arith.constant 0 : index
    %91 = vector.load %arg7[%c4_64, %c0_65, %c0_66] : memref<9x1x256xf32, #tpu.memory_space<vmem>>, vector<1x1x256xf32>
    %92 = vector.shape_cast %91 : vector<1x1x256xf32> to vector<1x256xf32>
    %93 = vector.broadcast %92 : vector<1x256xf32> to vector<16x256xf32>
    %94 = arith.mulf %63, %93 : vector<16x256xf32>
    %c64_67 = arith.constant 64 : index
    %c0_68 = arith.constant 0 : index
    %95 = vector.load %arg11[%c64_67, %c0_68] : memref<144x256xf32, #tpu.memory_space<vmem>>, vector<16x256xf32>
    tpu.vector_store %arg11[%c64_67, %c0_68], %94 {strides = array<i32>} : memref<144x256xf32, #tpu.memory_space<vmem>>, vector<16x256xf32>,
    %96 = arith.maximumf %90, %94 : vector<16x256xf32>
    %c255_i32_69 = arith.constant 255 : i32
    %97 = tpu.dynamic_rotate %63 by %c255_i32_69 dim 1 : vector<16x256xf32>, i32 -> vector<16x256xf32>
    %c5_70 = arith.constant 5 : index
    %c0_71 = arith.constant 0 : index
    %c0_72 = arith.constant 0 : index
    %98 = vector.load %arg7[%c5_70, %c0_71, %c0_72] : memref<9x1x256xf32, #tpu.memory_space<vmem>>, vector<1x1x256xf32>
    %99 = vector.shape_cast %98 : vector<1x1x256xf32> to vector<1x256xf32>
    %100 = vector.broadcast %99 : vector<1x256xf32> to vector<16x256xf32>
    %101 = arith.mulf %97, %100 : vector<16x256xf32>
    %c80 = arith.constant 80 : index
    %c0_73 = arith.constant 0 : index
    %102 = vector.load %arg11[%c80, %c0_73] : memref<144x256xf32, #tpu.memory_space<vmem>>, vector<16x256xf32>
    tpu.vector_store %arg11[%c80, %c0_73], %101 {strides = array<i32>} : memref<144x256xf32, #tpu.memory_space<vmem>>, vector<16x256xf32>,
    %103 = arith.maximumf %96, %101 : vector<16x256xf32>
    %c241_i32_74 = arith.constant 241 : i32
    %104 = tpu.dynamic_rotate %63 by %c241_i32_74 dim 1 : vector<16x256xf32>, i32 -> vector<16x256xf32>
    %c6_75 = arith.constant 6 : index
    %c0_76 = arith.constant 0 : index
    %c0_77 = arith.constant 0 : index
    %105 = vector.load %arg7[%c6_75, %c0_76, %c0_77] : memref<9x1x256xf32, #tpu.memory_space<vmem>>, vector<1x1x256xf32>
    %106 = vector.shape_cast %105 : vector<1x1x256xf32> to vector<1x256xf32>
    %107 = vector.broadcast %106 : vector<1x256xf32> to vector<16x256xf32>
    %108 = arith.mulf %104, %107 : vector<16x256xf32>
    %c96 = arith.constant 96 : index
    %c0_78 = arith.constant 0 : index
    %109 = vector.load %arg11[%c96, %c0_78] : memref<144x256xf32, #tpu.memory_space<vmem>>, vector<16x256xf32>
    tpu.vector_store %arg11[%c96, %c0_78], %108 {strides = array<i32>} : memref<144x256xf32, #tpu.memory_space<vmem>>, vector<16x256xf32>,
    %110 = arith.maximumf %103, %108 : vector<16x256xf32>
    %c240_i32_79 = arith.constant 240 : i32
    %111 = tpu.dynamic_rotate %63 by %c240_i32_79 dim 1 : vector<16x256xf32>, i32 -> vector<16x256xf32>
    %c7_80 = arith.constant 7 : index
    %c0_81 = arith.constant 0 : index
    %c0_82 = arith.constant 0 : index
    %112 = vector.load %arg7[%c7_80, %c0_81, %c0_82] : memref<9x1x256xf32, #tpu.memory_space<vmem>>, vector<1x1x256xf32>
    %113 = vector.shape_cast %112 : vector<1x1x256xf32> to vector<1x256xf32>
    %114 = vector.broadcast %113 : vector<1x256xf32> to vector<16x256xf32>
    %115 = arith.mulf %111, %114 : vector<16x256xf32>
    %c112 = arith.constant 112 : index
    %c0_83 = arith.constant 0 : index
    %116 = vector.load %arg11[%c112, %c0_83] : memref<144x256xf32, #tpu.memory_space<vmem>>, vector<16x256xf32>
    tpu.vector_store %arg11[%c112, %c0_83], %115 {strides = array<i32>} : memref<144x256xf32, #tpu.memory_space<vmem>>, vector<16x256xf32>,
    %117 = arith.maximumf %110, %115 : vector<16x256xf32>
    %c239_i32_84 = arith.constant 239 : i32
    %118 = tpu.dynamic_rotate %63 by %c239_i32_84 dim 1 : vector<16x256xf32>, i32 -> vector<16x256xf32>
    %c8_85 = arith.constant 8 : index
    %c0_86 = arith.constant 0 : index
    %c0_87 = arith.constant 0 : index
    %119 = vector.load %arg7[%c8_85, %c0_86, %c0_87] : memref<9x1x256xf32, #tpu.memory_space<vmem>>, vector<1x1x256xf32>
    %120 = vector.shape_cast %119 : vector<1x1x256xf32> to vector<1x256xf32>
    %121 = vector.broadcast %120 : vector<1x256xf32> to vector<16x256xf32>
    %122 = arith.mulf %118, %121 : vector<16x256xf32>
    %c128 = arith.constant 128 : index
    %c0_88 = arith.constant 0 : index
    %123 = vector.load %arg11[%c128, %c0_88] : memref<144x256xf32, #tpu.memory_space<vmem>>, vector<16x256xf32>
    tpu.vector_store %arg11[%c128, %c0_88], %122 {strides = array<i32>} : memref<144x256xf32, #tpu.memory_space<vmem>>, vector<16x256xf32>,
    %124 = arith.maximumf %117, %122 : vector<16x256xf32>
    %125 = vector.extract_strided_slice %124 {offsets = [0, 0], sizes = [8, 256], strides = [1, 1]} : vector<16x256xf32> to vector<8x256xf32>
    %cst_89 = arith.constant dense<0xFF800000> : vector<256xf32>
    %126 = vector.multi_reduction <maximumf>, %125, %cst_89 [0] : vector<8x256xf32> to vector<256xf32>
    %127 = vector.shape_cast %126 : vector<256xf32> to vector<1x256xf32>
    %128 = vector.extract_strided_slice %124 {offsets = [8, 0], sizes = [8, 256], strides = [1, 1]} : vector<16x256xf32> to vector<8x256xf32>
    %cst_90 = arith.constant dense<0xFF800000> : vector<256xf32>
    %129 = vector.multi_reduction <maximumf>, %128, %cst_90 [0] : vector<8x256xf32> to vector<256xf32>
    %130 = vector.shape_cast %129 : vector<256xf32> to vector<1x256xf32>
    %cst_91 = arith.constant 1.000000e+00 : f32
    %131 = vector.broadcast %cst_91 : f32 to vector<16x1xf32>
    %132 = arith.addf %61, %131 : vector<16x1xf32>
    %cst_92 = arith.constant 5.000000e-01 : f32
    %133 = vector.broadcast %cst_92 : f32 to vector<16x1xf32>
    %134 = arith.mulf %132, %133 : vector<16x1xf32>
    %135 = vector.broadcast %134 : vector<16x1xf32> to vector<16x256xf32>
    %136 = vector.broadcast %127 : vector<1x256xf32> to vector<16x256xf32>
    %137 = arith.mulf %135, %136 : vector<16x256xf32>
    %cst_93 = arith.constant 1.000000e+00 : f32
    %138 = vector.broadcast %cst_93 : f32 to vector<16x1xf32>
    %139 = arith.subf %138, %134 : vector<16x1xf32>
    %140 = vector.broadcast %139 : vector<16x1xf32> to vector<16x256xf32>
    %141 = vector.broadcast %130 : vector<1x256xf32> to vector<16x256xf32>
    %142 = arith.mulf %140, %141 : vector<16x256xf32>
    %143 = arith.addf %137, %142 : vector<16x256xf32>
    %c0_94 = arith.constant 0 : index
    %c0_95 = arith.constant 0 : index
    %144 = vector.load %arg11[%c0_94, %c0_95] : memref<144x256xf32, #tpu.memory_space<vmem>>, vector<16x256xf32>
    %145 = arith.subf %144, %143 : vector<16x256xf32>
    %cst_96 = arith.constant 2.000000e+01 : f32
    %146 = vector.broadcast %cst_96 : f32 to vector<16x256xf32>
    %147 = arith.mulf %146, %145 : vector<16x256xf32>
    %148 = math.exp %147 : vector<16x256xf32>
    %c0_97 = arith.constant 0 : index
    %c0_98 = arith.constant 0 : index
    %149 = vector.load %arg11[%c0_97, %c0_98] : memref<144x256xf32, #tpu.memory_space<vmem>>, vector<16x256xf32>
    tpu.vector_store %arg11[%c0_97, %c0_98], %148 {strides = array<i32>} : memref<144x256xf32, #tpu.memory_space<vmem>>, vector<16x256xf32>,
    %c16_99 = arith.constant 16 : index
    %c0_100 = arith.constant 0 : index
    %150 = vector.load %arg11[%c16_99, %c0_100] : memref<144x256xf32, #tpu.memory_space<vmem>>, vector<16x256xf32>
    %151 = arith.subf %150, %143 : vector<16x256xf32>
    %cst_101 = arith.constant 2.000000e+01 : f32
    %152 = vector.broadcast %cst_101 : f32 to vector<16x256xf32>
    %153 = arith.mulf %152, %151 : vector<16x256xf32>
    %154 = math.exp %153 : vector<16x256xf32>
    %c16_102 = arith.constant 16 : index
    %c0_103 = arith.constant 0 : index
    %155 = vector.load %arg11[%c16_102, %c0_103] : memref<144x256xf32, #tpu.memory_space<vmem>>, vector<16x256xf32>
    tpu.vector_store %arg11[%c16_102, %c0_103], %154 {strides = array<i32>} : memref<144x256xf32, #tpu.memory_space<vmem>>, vector<16x256xf32>,
    %c32_104 = arith.constant 32 : index
    %c0_105 = arith.constant 0 : index
    %156 = vector.load %arg11[%c32_104, %c0_105] : memref<144x256xf32, #tpu.memory_space<vmem>>, vector<16x256xf32>
    %157 = arith.subf %156, %143 : vector<16x256xf32>
    %cst_106 = arith.constant 2.000000e+01 : f32
    %158 = vector.broadcast %cst_106 : f32 to vector<16x256xf32>
    %159 = arith.mulf %158, %157 : vector<16x256xf32>
    %160 = math.exp %159 : vector<16x256xf32>
    %c32_107 = arith.constant 32 : index
    %c0_108 = arith.constant 0 : index
    %161 = vector.load %arg11[%c32_107, %c0_108] : memref<144x256xf32, #tpu.memory_space<vmem>>, vector<16x256xf32>
    tpu.vector_store %arg11[%c32_107, %c0_108], %160 {strides = array<i32>} : memref<144x256xf32, #tpu.memory_space<vmem>>, vector<16x256xf32>,
    %c48_109 = arith.constant 48 : index
    %c0_110 = arith.constant 0 : index
    %162 = vector.load %arg11[%c48_109, %c0_110] : memref<144x256xf32, #tpu.memory_space<vmem>>, vector<16x256xf32>
    %163 = arith.subf %162, %143 : vector<16x256xf32>
    %cst_111 = arith.constant 2.000000e+01 : f32
    %164 = vector.broadcast %cst_111 : f32 to vector<16x256xf32>
    %165 = arith.mulf %164, %163 : vector<16x256xf32>
    %166 = math.exp %165 : vector<16x256xf32>
    %c48_112 = arith.constant 48 : index
    %c0_113 = arith.constant 0 : index
    %167 = vector.load %arg11[%c48_112, %c0_113] : memref<144x256xf32, #tpu.memory_space<vmem>>, vector<16x256xf32>
    tpu.vector_store %arg11[%c48_112, %c0_113], %166 {strides = array<i32>} : memref<144x256xf32, #tpu.memory_space<vmem>>, vector<16x256xf32>,
    %c64_114 = arith.constant 64 : index
    %c0_115 = arith.constant 0 : index
    %168 = vector.load %arg11[%c64_114, %c0_115] : memref<144x256xf32, #tpu.memory_space<vmem>>, vector<16x256xf32>
    %169 = arith.subf %168, %143 : vector<16x256xf32>
    %cst_116 = arith.constant 2.000000e+01 : f32
    %170 = vector.broadcast %cst_116 : f32 to vector<16x256xf32>
    %171 = arith.mulf %170, %169 : vector<16x256xf32>
    %172 = math.exp %171 : vector<16x256xf32>
    %c64_117 = arith.constant 64 : index
    %c0_118 = arith.constant 0 : index
    %173 = vector.load %arg11[%c64_117, %c0_118] : memref<144x256xf32, #tpu.memory_space<vmem>>, vector<16x256xf32>
    tpu.vector_store %arg11[%c64_117, %c0_118], %172 {strides = array<i32>} : memref<144x256xf32, #tpu.memory_space<vmem>>, vector<16x256xf32>,
    %c80_119 = arith.constant 80 : index
    %c0_120 = arith.constant 0 : index
    %174 = vector.load %arg11[%c80_119, %c0_120] : memref<144x256xf32, #tpu.memory_space<vmem>>, vector<16x256xf32>
    %175 = arith.subf %174, %143 : vector<16x256xf32>
    %cst_121 = arith.constant 2.000000e+01 : f32
    %176 = vector.broadcast %cst_121 : f32 to vector<16x256xf32>
    %177 = arith.mulf %176, %175 : vector<16x256xf32>
    %178 = math.exp %177 : vector<16x256xf32>
    %c80_122 = arith.constant 80 : index
    %c0_123 = arith.constant 0 : index
    %179 = vector.load %arg11[%c80_122, %c0_123] : memref<144x256xf32, #tpu.memory_space<vmem>>, vector<16x256xf32>
    tpu.vector_store %arg11[%c80_122, %c0_123], %178 {strides = array<i32>} : memref<144x256xf32, #tpu.memory_space<vmem>>, vector<16x256xf32>,
    %c96_124 = arith.constant 96 : index
    %c0_125 = arith.constant 0 : index
    %180 = vector.load %arg11[%c96_124, %c0_125] : memref<144x256xf32, #tpu.memory_space<vmem>>, vector<16x256xf32>
    %181 = arith.subf %180, %143 : vector<16x256xf32>
    %cst_126 = arith.constant 2.000000e+01 : f32
    %182 = vector.broadcast %cst_126 : f32 to vector<16x256xf32>
    %183 = arith.mulf %182, %181 : vector<16x256xf32>
    %184 = math.exp %183 : vector<16x256xf32>
    %c96_127 = arith.constant 96 : index
    %c0_128 = arith.constant 0 : index
    %185 = vector.load %arg11[%c96_127, %c0_128] : memref<144x256xf32, #tpu.memory_space<vmem>>, vector<16x256xf32>
    tpu.vector_store %arg11[%c96_127, %c0_128], %184 {strides = array<i32>} : memref<144x256xf32, #tpu.memory_space<vmem>>, vector<16x256xf32>,
    %c112_129 = arith.constant 112 : index
    %c0_130 = arith.constant 0 : index
    %186 = vector.load %arg11[%c112_129, %c0_130] : memref<144x256xf32, #tpu.memory_space<vmem>>, vector<16x256xf32>
    %187 = arith.subf %186, %143 : vector<16x256xf32>
    %cst_131 = arith.constant 2.000000e+01 : f32
    %188 = vector.broadcast %cst_131 : f32 to vector<16x256xf32>
    %189 = arith.mulf %188, %187 : vector<16x256xf32>
    %190 = math.exp %189 : vector<16x256xf32>
    %c112_132 = arith.constant 112 : index
    %c0_133 = arith.constant 0 : index
    %191 = vector.load %arg11[%c112_132, %c0_133] : memref<144x256xf32, #tpu.memory_space<vmem>>, vector<16x256xf32>
    tpu.vector_store %arg11[%c112_132, %c0_133], %190 {strides = array<i32>} : memref<144x256xf32, #tpu.memory_space<vmem>>, vector<16x256xf32>,
    %c128_134 = arith.constant 128 : index
    %c0_135 = arith.constant 0 : index
    %192 = vector.load %arg11[%c128_134, %c0_135] : memref<144x256xf32, #tpu.memory_space<vmem>>, vector<16x256xf32>
    %193 = arith.subf %192, %143 : vector<16x256xf32>
    %cst_136 = arith.constant 2.000000e+01 : f32
    %194 = vector.broadcast %cst_136 : f32 to vector<16x256xf32>
    %195 = arith.mulf %194, %193 : vector<16x256xf32>
    %196 = math.exp %195 : vector<16x256xf32>
    %c128_137 = arith.constant 128 : index
    %c0_138 = arith.constant 0 : index
    %197 = vector.load %arg11[%c128_137, %c0_138] : memref<144x256xf32, #tpu.memory_space<vmem>>, vector<16x256xf32>
    tpu.vector_store %arg11[%c128_137, %c0_138], %196 {strides = array<i32>} : memref<144x256xf32, #tpu.memory_space<vmem>>, vector<16x256xf32>,
    %c0_139 = arith.constant 0 : index
    %c0_140 = arith.constant 0 : index
    %198 = vector.load %arg4[%c0_139, %c0_140] : memref<16x144xf32, #tpu.memory_space<vmem>>, vector<16x144xf32>
    %c0_141 = arith.constant 0 : index
    %c0_142 = arith.constant 0 : index
    %199 = vector.load %arg11[%c0_141, %c0_142] : memref<144x256xf32, #tpu.memory_space<vmem>>, vector<144x256xf32>
    %cst_143 = arith.constant dense<0.000000e+00> : vector<16x256xf32>
    %200 = tpu.matmul %198, %199, %cst_143 {dimension_numbers = #tpu.dot_dimension_numbers<[1], [0], [0], [1], [0, 0, 1, 1], [], []>} : vector<16x144xf32>, vector<144x256xf32>, vector<16x256xf32> -> vector<16x256xf32>
    %cst_144 = arith.constant 1.000000e-30 : f32
    %201 = vector.broadcast %cst_144 : f32 to vector<16x256xf32>
    %202 = arith.maximumf %200, %201 : vector<16x256xf32>
    %203 = math.log %202 : vector<16x256xf32>
    %cst_145 = arith.constant 2.000000e+01 : f32
    %204 = vector.broadcast %cst_145 : f32 to vector<16x256xf32>
    %205 = arith.divf %203, %204 : vector<16x256xf32>
    %206 = arith.addf %205, %143 : vector<16x256xf32>
    %c0_146 = arith.constant 0 : index
    %c0_147 = arith.constant 0 : index
    %207 = vector.load %arg5[%c0_146, %c0_147] : memref<16x1xf32, #tpu.memory_space<vmem>>, vector<16x1xf32>
    %208 = vector.broadcast %207 : vector<16x1xf32> to vector<16x256xf32>
    %209 = arith.addf %206, %208 : vector<16x256xf32>
    %210 = vector.broadcast %61 : vector<16x1xf32> to vector<16x256xf32>
    %211 = arith.mulf %209, %210 : vector<16x256xf32>
    %c0_148 = arith.constant 0 : index
    %c0_149 = arith.constant 0 : index
    %c0_150 = arith.constant 0 : index
    %212 = vector.load %arg9[%c0_148, %c0_149, %c0_150] : memref<1x16x256xf32, #tpu.memory_space<vmem>>, vector<1x16x256xf32>
    %213 = vector.shape_cast %212 : vector<1x16x256xf32> to vector<16x256xf32>
    %214 = vector.shape_cast %211 : vector<16x256xf32> to vector<1x16x256xf32>
    tpu.vector_store %arg9[%c0_148, %c0_149, %c0_150], %214 {strides = array<i32>} : memref<1x16x256xf32, #tpu.memory_space<vmem>>, vector<1x16x256xf32>,
    return
  }
  func.func @transform_0(%arg0: i32) -> (i32, i32, i32) {
    %c0_i32 = arith.constant 0 : i32
    %c0_i32_0 = arith.constant 0 : i32
    %c0_i32_1 = arith.constant 0 : i32
    return %arg0, %c0_i32, %c0_i32_0 : i32, i32, i32
  }
  func.func @transform_1(%arg0: i32) -> (i32, i32) {
    %c0_i32 = arith.constant 0 : i32
    %c0_i32_0 = arith.constant 0 : i32
    %c0_i32_1 = arith.constant 0 : i32
    return %c0_i32, %c0_i32_0 : i32, i32
  }
  func.func @transform_2(%arg0: i32) -> (i32, i32) {
    %c0_i32 = arith.constant 0 : i32
    %c0_i32_0 = arith.constant 0 : i32
    %c0_i32_1 = arith.constant 0 : i32
    return %c0_i32, %c0_i32_0 : i32, i32
  }
  func.func @transform_3(%arg0: i32) -> (i32, i32) {
    %c0_i32 = arith.constant 0 : i32
    %c0_i32_0 = arith.constant 0 : i32
    %c0_i32_1 = arith.constant 0 : i32
    return %c0_i32, %c0_i32_0 : i32, i32
  }
  func.func @transform_4(%arg0: i32) -> (i32, i32) {
    %c0_i32 = arith.constant 0 : i32
    %c0_i32_0 = arith.constant 0 : i32
    %c0_i32_1 = arith.constant 0 : i32
    return %c0_i32, %c0_i32_0 : i32, i32
  }
  func.func @transform_5(%arg0: i32) -> (i32, i32, i32) {
    %c0_i32 = arith.constant 0 : i32
    %c0_i32_0 = arith.constant 0 : i32
    %c0_i32_1 = arith.constant 0 : i32
    %c0_i32_2 = arith.constant 0 : i32
    return %c0_i32, %c0_i32_0, %c0_i32_1 : i32, i32, i32
  }
  func.func @transform_6(%arg0: i32) -> (i32, i32, i32) {
    %c0_i32 = arith.constant 0 : i32
    %c0_i32_0 = arith.constant 0 : i32
    %c0_i32_1 = arith.constant 0 : i32
    %c0_i32_2 = arith.constant 0 : i32
    return %c0_i32, %c0_i32_0, %c0_i32_1 : i32, i32, i32
  }
  func.func @transform_7(%arg0: i32) -> (i32, i32) {
    %c0_i32 = arith.constant 0 : i32
    %c0_i32_0 = arith.constant 0 : i32
    %c0_i32_1 = arith.constant 0 : i32
    return %c0_i32, %c0_i32_0 : i32, i32
  }
  func.func @transform_8(%arg0: i32) -> (i32, i32, i32) {
    %c0_i32 = arith.constant 0 : i32
    %c0_i32_0 = arith.constant 0 : i32
    %c0_i32_1 = arith.constant 0 : i32
    return %arg0, %c0_i32, %c0_i32_0 : i32, i32, i32
  }
}

</mosaic_0001>

<bundles_post_ra>
// kernel: forward.1
= control target key start
LH: loop header
LB: loop body
LE: loop exit
PB: predicated region body
PF: predicated region fallthrough
CT: control target
= control target key end

     0   :  { %s1716_s27 = smov 0   ;;  %s2343_s0 = inlined_call_operand.vmem [shape: f32[2,8,256], index: 0, kind: input, shape index: {}]   ;;  %s2344_s1 = inlined_call_operand.vmem [shape: f32[16,72], index: 1, kind: input, shape index: {}]   ;;  %s2345_s2 = inlined_call_operand.vmem [shape: f32[16,1], index: 2, kind: input, shape index: {}]   ;;  %s2346_s3 = inlined_call_operand.vmem [shape: f32[16,144], index: 3, kind: input, shape index: {}]   ;;  %s2347_s4 = inlined_call_operand.vmem [shape: f32[16,1], index: 4, kind: input, shape index: {}]   ;;  %s2348_s5 = inlined_call_operand.vmem [shape: f32[9,1,256], index: 5, kind: input, shape index: {}, may-alias: {5,6}]   ;;  %s2349_s6 = inlined_call_operand.vmem [shape: f32[9,1,256], index: 6, kind: input, shape index: {}, may-alias: {5,6}]   ;;  %s2350_s7 = inlined_call_operand.vmem [shape: f32[16,1], index: 7, kind: input, shape index: {}]   ;;  %s2351_s8 = inlined_call_operand.vmem [shape: f32[2,16,256], index: 8, kind: output, shape index: {}]  }
   0x1 LB: > { %s1468_s28 = sadd.s32 4294967295, %s1659_s27   ;;  %p1472_p0 = scmp.ge.s32.totalorder %s1659_s27, 1  ;;  %s1659_s27 = sphi %s1716_s27, %s18_s27  }
   0x2   : > { %p262_p1 = scmp.lt.s32.totalorder %s1659_s27, 3 }
   0x4   : > { %p263_p2 = pnand %p1472_p0, %p262_p1 }
   0x6   : > { %266 = sbr.rel (%p263_p2) target bundleno = 885 (0x375), region = 52 }
   0xd   : > { %p296_p3 = scmp.lt.s32.totalorder %s1468_s28, 1  ;;  %s1661_s11 = smov 16   ;;  %v1667_v2 = vmov 0.0   ;;  %v1669_v3 = vmov 0   ;;  %v539_v4 = vld [vmem:[%s2345_s2 + $0x8] sm:$0xff]  ;;  %v538_v5 = vld [vmem:[%s2345_s2] sm:$0xff]  ;;  %v312_v8 = vlaneseq }
   0xe   : > { %s1662_s12 = smov 17   ;;  %s1663_s13 = smov 15   ;;  %621 = vmatprep.mubr.f32.mxu0 %v1667_v2  ;;  %1572 = vset.pattern.permute.xlu1 %v1669_v3  ;;  %v1776_v6 = vld [vmem:[%s2350_s7] sm:$0xff]  ;;  %v1781_v7 = vld [vmem:[%s2350_s7 + $0x8] sm:$0xff]  ;;  %vm550_vm8 = vcmask 588800   ;;  %vm1284_vm9 = vcmask 130048  }
   0xf   : > { %s2361_s28 = smov (!%p296_p3, %s1468_s28), 1  ;;  %s1664_s14 = smov 1   ;;  %1571 = vset.pattern.permute.xlu0 %v1669_v3  ;;  %v320_v9 = vshrl.u32 %v312_v8, 7  ;;  %v1785_v10 = vand.u32 127, %v312_v8  ;;  %v1477_v13 = vld [vmem:[%s2348_s5 + $0x2] sm:$0x3] }
  0x10   : > { %s1499_s29 = sshll.u32 %s2361_s28, 4  ;;  %s1665_s15 = smov 127   ;;  %v317_v14 = vld [vmem:[%s2348_s5] sm:$0x3]  ;;  %v1478_v31 = vld [vmem:[%s2348_s5 + $0x4] sm:$0x3] }
  0x11   : > { %s300_s10 = scalar_lea.vmem %s2343_s0, %s1499_s29  ;;  %s1666_s16 = smov 113   ;;  %v1787_v11 = vsub.s32 0, %v320_v9  ;;  %v1789_v12 = vsub.s32 1, %v320_v9  ;;  %vm337_vm0 = vcmp.lt.s32.totalorder %v1785_v10, 16  ;;  %vm314_vm1 = vcmp.lt.s32.totalorder %v1785_v10, 17 }
  0x12   : > { %v1730_v0 = vld [vmem:[%s300_s10] sm:$0xff]  ;;  %v1736_v1 = vld [vmem:[%s300_s10 + $0x8] sm:$0xff]  ;;  %s1668_s17 = smov 112   ;;  %s1670_s18 = smov 111   ;;  %vm361_vm2 = vcmp.lt.s32.totalorder %v1785_v10, 15  ;;  %vm385_vm3 = vcmp.lt.s32.totalorder %v1785_v10, 1 }
  0x13   : > { %333 = vrot.lane.b32.xlu1 %v1730_v0, %s1661_s11  ;;  %308 = vrot.lane.b32.xlu0 %v1730_v0, %s1662_s12  ;;  %v346_v17 = vrot.slane %v1477_v13, %v1787_v11  ;;  %v322_v18 = vrot.slane %v317_v14, %v1787_v11  ;;  %v326_v19 = vrot.slane %v317_v14, %v1789_v12  ;;  %v1479_v32 = vld [vmem:[%s2348_s5 + $0x6] sm:$0x3]  ;;  %v1480_v37 = vld [vmem:[%s2348_s5 + $0x8] sm:$0x3]  ;;  %vm426_vm4 = vcmp.lt.s32.totalorder %v1785_v10, 127  ;;  %s1500_s29 = sshll.u32 %s2361_s28, 5 }
  0x14   : > { %v350_v20 = vrot.slane %v1477_v13, %v1789_v12  ;;  %v370_v38 = vrot.slane %v1478_v31, %v1787_v11  ;;  %v374_v39 = vrot.slane %v1478_v31, %v1789_v12  ;;  %v394_v40 = vrot.slane %v1479_v32, %v1787_v11  ;;  %v1481_v42 = vld [vmem:[%s2348_s5 + $0xa] sm:$0x3]  ;;  %v1482_v8 = vld [vmem:[%s2348_s5 + $0xc] sm:$0x3]  ;;  %s305_s10 = scalar_lea.vmem %s2351_s8, %s1500_s29 }
  0x15   : > { %v398_v41 = vrot.slane %v1479_v32, %v1789_v12  ;;  %v415_v47 = vrot.slane %v1480_v37, %v1789_v12  ;;  %v411_v48 = vrot.slane %v1480_v37, %v1787_v11  ;;  %v435_v51 = vrot.slane %v1481_v42, %v1787_v11 }
  0x16   : > { %v439_v52 = vrot.slane %v1481_v42, %v1789_v12  ;;  %vm450_vm5 = vcmp.lt.s32.totalorder %v1785_v10, 113  ;;  %vm474_vm6 = vcmp.lt.s32.totalorder %v1785_v10, 112  ;;  %vm498_vm7 = vcmp.lt.s32.totalorder %v1785_v10, 111 }
  0x17   : > { %335 = vrot.lane.b32.xlu1 %v1736_v1, %s1661_s11  ;;  %310 = vrot.lane.b32.xlu0 %v1736_v1, %s1662_s12  ;;  %v419_v61 = vmul.f32 %v415_v47, %v1736_v1  ;;  %v418_v62 = vmul.f32 %v411_v48, %v1730_v0 }
  0x1b   : > { %359 = vrot.lane.b32.xlu1 %v1736_v1, %s1663_s13  ;;  %357 = vrot.lane.b32.xlu0 %v1730_v0, %s1663_s13 }
  0x1f   : > { %383 = vrot.lane.b32.xlu1 %v1736_v1, %s1664_s14  ;;  %381 = vrot.lane.b32.xlu0 %v1730_v0, %s1664_s14 }
  0x23   : > { %424 = vrot.lane.b32.xlu1 %v1736_v1, %s1665_s15  ;;  %422 = vrot.lane.b32.xlu0 %v1730_v0, %s1665_s15 }
  0x27   : > { %448 = vrot.lane.b32.xlu1 %v1736_v1, %s1666_s16  ;;  %446 = vrot.lane.b32.xlu0 %v1730_v0, %s1666_s16 }
  0x2b   : > { %472 = vrot.lane.b32.xlu1 %v1736_v1, %s1668_s17  ;;  %470 = vrot.lane.b32.xlu0 %v1730_v0, %s1668_s17 }
  0x2f   : > { %496 = vrot.lane.b32.xlu1 %v1736_v1, %s1670_s18  ;;  %494 = vrot.lane.b32.xlu0 %v1730_v0, %s1670_s18  ;;  %v1483_v1 = vld [vmem:[%s2348_s5 + $0xe] sm:$0x3] }
  0x33   : > { %547 = vperm.xlu1 %1572, %v539_v4   ;;  %542 = vperm.xlu0 %1571, %v538_v5  }
  0x37   : > { %638 = vperm.xlu1 %1572, %v1776_v6   ;;  %643 = vperm.xlu0 %1571, %v1781_v7  }
  0x85   : > { %v334_v15 = vpop.permute.xlu1 %333  ;;  %v309_v16 = vpop.permute.xlu0 %308 }
  0x89   : > { %v336_v21 = vpop.permute.xlu1 %335  ;;  %v311_v22 = vpop.permute.xlu0 %310 }
  0x8a   : > { %v338_v23 = vsel %vm337_vm0, %v334_v15, %v336_v21  ;;  %v339_v24 = vsel %vm337_vm0, %v336_v21, %v334_v15  ;;  %v315_v25 = vsel %vm314_vm1, %v309_v16, %v311_v22  ;;  %v316_v26 = vsel %vm314_vm1, %v311_v22, %v309_v16 }
  0x8b   : > { %v353_v27 = vmul.f32 %v346_v17, %v339_v24  ;;  %v329_v28 = vmul.f32 %v322_v18, %v316_v26  ;;  %v330_v29 = vmul.f32 %v326_v19, %v315_v25  ;;  %v354_v30 = vmul.f32 %v350_v20, %v338_v23  ;;  %v1484_v19 = vld [vmem:[%s2348_s5 + $0x10] sm:$0x3] }
  0x8c   : > { %v459_v15 = vrot.slane %v1482_v8, %v1787_v11  ;;  %v463_v16 = vrot.slane %v1482_v8, %v1789_v12  ;;  %v483_v17 = vrot.slane %v1483_v1, %v1787_v11  ;;  %v487_v18 = vrot.slane %v1483_v1, %v1789_v12 }
  0x8d   : > { %v360_v33 = vpop.permute.xlu1 %359  ;;  %v358_v34 = vpop.permute.xlu0 %357  ;;  %v1501_v35 = vpack.c.bf16 %v354_v30, %v330_v29  ;;  %v1503_v36 = vpack.c.bf16 %v353_v27, %v329_v28  ;;  %v511_v26 = vrot.slane %v1484_v19, %v1789_v12  ;;  %v507_v31 = vrot.slane %v1484_v19, %v1787_v11 }
  0x8e   : > { %v362_v43 = vsel %vm361_vm2, %v358_v34, %v360_v33  ;;  %v363_v44 = vsel %vm361_vm2, %v360_v33, %v358_v34 }
  0x8f   : > { %1502 = vmatprep.subr.bf16.mxu0 %v1501_v35  ;;  %v377_v53 = vmul.f32 %v370_v38, %v363_v44  ;;  %v378_v54 = vmul.f32 %v374_v39, %v362_v43 }
  0x90   : > { %1504 = vmatpush1.bf16.msra.mxu0 %v1503_v36 }
  0x91   : > { %v384_v45 = vpop.permute.xlu1 %383  ;;  %v382_v46 = vpop.permute.xlu0 %381 }
  0x92   : > { %v386_v49 = vsel %vm385_vm3, %v382_v46, %v384_v45  ;;  %v387_v50 = vsel %vm385_vm3, %v384_v45, %v382_v46 }
  0x93   : > { %v401_v55 = vmul.f32 %v394_v40, %v387_v50  ;;  %v402_v56 = vmul.f32 %v398_v41, %v386_v49  ;;  %v518_v40 = vld [vmem:[%s2344_s1] sm:$0xff]  ;;  %v519_v41 = vld [vmem:[%s2344_s1 + $0x8] sm:$0xff] }
  0x95   : > { %v425_v57 = vpop.permute.xlu1 %424  ;;  %v423_v58 = vpop.permute.xlu0 %422  ;;  %v1505_v59 = vpack.c.bf16 %v402_v56, %v378_v54  ;;  %v1507_v60 = vpack.c.bf16 %v401_v55, %v377_v53 }
  0x96   : > { %v427_v63 = vsel %vm426_vm4, %v423_v58, %v425_v57  ;;  %v428_v3 = vsel %vm426_vm4, %v425_v57, %v423_v58  ;;  %v990_v57 = vadd.f32 1.0, %v1776_v6 }
  0x97   : > { %v442_v4 = vmul.f32 %v435_v51, %v427_v63  ;;  %v443_v5 = vmul.f32 %v439_v52, %v428_v3  ;;  %1506 = vmatprep.subr.bf16.mxu0 %v1505_v59  ;;  %v991_v59 = vadd.f32 1.0, %v1781_v7  ;;  %v1390_v7 = vld [vmem:[%s2347_s4 + $0x8] sm:$0xff] }
  0x98   : > { %1508 = vmatpush1.bf16.msra.mxu0 %v1507_v60  ;;  %v992_v58 = vmul.f32 0.5, %v990_v57 }
  0x99   : > { %v449_v9 = vpop.permute.xlu1 %448  ;;  %v447_v0 = vpop.permute.xlu0 %446  ;;  %v1509_v13 = vpack.c.bf16 %v443_v5, %v419_v61  ;;  %v1511_v14 = vpack.c.bf16 %v442_v4, %v418_v62  ;;  %v993_v60 = vmul.f32 0.5, %v991_v59  ;;  %v1389_v62 = vld [vmem:[%s2347_s4] sm:$0xff] }
  0x9a   : > { %v451_v20 = vsel %vm450_vm5, %v447_v0, %v449_v9  ;;  %v452_v21 = vsel %vm450_vm5, %v449_v9, %v447_v0  ;;  %v1008_v6 = vsub.f32 1.0, %v992_v58  ;;  %v1245_v0 = vld [vmem:[%s2346_s3 + $0x8] sm:$0xff] }
  0x9b   : > { %1510 = vmatprep.subr.bf16.mxu0 %v1509_v13  ;;  %v466_v27 = vmul.f32 %v459_v15, %v451_v20  ;;  %v467_v28 = vmul.f32 %v463_v16, %v452_v21  ;;  %v1009_v61 = vsub.f32 1.0, %v993_v60  ;;  %1495 = vmatprep.mubr.msk.f32.mxu1 %vm1284_vm9, %v1245_v0 }
  0x9c   : > { %1512 = vmatpush1.bf16.msra.mxu0 %v1511_v14 }
  0x9d   : > { %v473_v22 = vpop.permute.xlu1 %472  ;;  %v471_v23 = vpop.permute.xlu0 %470 }
  0x9e   : > { %v475_v24 = vsel %vm474_vm6, %v471_v23, %v473_v22  ;;  %v476_v25 = vsel %vm474_vm6, %v473_v22, %v471_v23  ;;  %v1487_v23 = vld [vmem:[%s2349_s6 + $0x2] sm:$0x3] }
  0x9f   : > { %v490_v29 = vmul.f32 %v483_v17, %v475_v24  ;;  %v491_v30 = vmul.f32 %v487_v18, %v476_v25  ;;  %v662_v24 = vld [vmem:[%s2349_s6] sm:$0x3]  ;;  %v1490_v25 = vld [vmem:[%s2349_s6 + $0x8] sm:$0x3] }
  0xa1   : > { %v497_v32 = vpop.permute.xlu1 %496  ;;  %v495_v33 = vpop.permute.xlu0 %494  ;;  %v1513_v34 = vpack.c.bf16 %v491_v30, %v467_v28  ;;  %v1515_v35 = vpack.c.bf16 %v490_v29, %v466_v27  ;;  %v700_v27 = vrot.slane %v1487_v23, %v1787_v11  ;;  %v704_v28 = vrot.slane %v1487_v23, %v1789_v12  ;;  %v1488_v30 = vld [vmem:[%s2349_s6 + $0x4] sm:$0x3] }
  0xa2   : > { %v499_v36 = vsel %vm498_vm7, %v495_v33, %v497_v32  ;;  %v500_v37 = vsel %vm498_vm7, %v497_v32, %v495_v33  ;;  %v667_v33 = vrot.slane %v662_v24, %v1787_v11 }
  0xa3   : > { %v515_v38 = vmul.f32 %v511_v26, %v500_v37  ;;  %1514 = vmatprep.subr.bf16.mxu0 %v1513_v34  ;;  %v514_v39 = vmul.f32 %v507_v31, %v499_v36  ;;  %v671_v34 = vrot.slane %v662_v24, %v1789_v12  ;;  %v803_v36 = vrot.slane %v1490_v25, %v1789_v12 }
  0xa4   : > { %1516 = vmatpush1.bf16.msra.mxu0 %v1515_v35  ;;  %v2016_v35 = vrot.slane %v1490_v25, %v1787_v11 }
  0xa5   : > { %573 = vmatprep.subr.mxu0 %v515_v38 }
  0xa8   : > { %574 = vmatpush1.msra.mxu0 %v514_v39  ;;  %v737_v39 = vrot.slane %v1488_v30, %v1787_v11 }
  0xa9   : > { %1485 = vmatmul.mubr.msk.f32.vlgmr.msra.gmra.mrb[0].mxu0 %vm550_vm8, %v518_v40  ;;  %v741_v40 = vrot.slane %v1488_v30, %v1789_v12 }
  0xaa   : > { %627 = vmatprep.mubr.f32.mxu0 %v1667_v2 }
  0xad   : > { %1486 = vmatmul.mubr.msk.f32.gmra.mrb[2].mxu0 %vm550_vm8, %v519_v41  ;;  %v1489_v41 = vld [vmem:[%s2349_s6 + $0x6] sm:$0x3] }
  0xae   : > { %v774_v59 = vrot.slane %v1489_v41, %v1787_v11 }
  0xb2   : > { %v548_v42 = vpop.permute.xlu1 %547  ;;  %v543_v43 = vpop.permute.xlu0 %542 }
  0xb6   : > { %v1885_v45 = vpop.permute.xlu1 %638  ;;  %v1892_v2 = vpop.permute.xlu0 %643 }
  0xb7   : > { %2356 = vst [vmem:[#allocation4_spill] sm:$0xff] %v1885_v45  ;;  %2357 = vst [vmem:[#allocation5_spill] sm:$0xff] %v1892_v2 }
 0x17c   : > { %v623_v44 = vpop.f32.mrb[0].mxu0 }
 0x17d   : > { %v624_v46 = vadd.f32 %v623_v44, %v543_v43  ;;  %v625_v47 = vpop.f32.mrb[1].mxu0 }
 0x17e   : > { %v626_v53 = vadd.f32 %v625_v47, %v543_v43 }
 0x17f   : > { %v1888_v48 = vmul.f32 %v1885_v45, %v624_v46 }
 0x180   : > { %v629_v49 = vpop.f32.mrb[2].mxu0  ;;  %v1926_v54 = vmul.f32 %v1885_v45, %v626_v53 }
 0x181   : > { %v630_v50 = vadd.f32 %v629_v49, %v548_v42  ;;  %v631_v51 = vpop.f32.mrb[3].mxu0  ;;  %650 = vrot.lane.b32.xlu1 %v1888_v48, %s1662_s12 }
 0x182   : > { %v632_v55 = vadd.f32 %v631_v51, %v548_v42 }
 0x183   : > { %v1895_v52 = vmul.f32 %v1892_v2, %v630_v50 }
 0x184   : > { %v1933_v56 = vmul.f32 %v1892_v2, %v632_v55 }
 0x185   : > { %652 = vrot.lane.b32.xlu0 %v1895_v52, %s1662_s12  ;;  %682 = vrot.lane.b32.xlu1 %v1888_v48, %s1661_s11 }
 0x189   : > { %684 = vrot.lane.b32.xlu0 %v1895_v52, %s1661_s11  ;;  %719 = vrot.lane.b32.xlu1 %v1888_v48, %s1663_s13 }
 0x18d   : > { %721 = vrot.lane.b32.xlu0 %v1895_v52, %s1663_s13  ;;  %756 = vrot.lane.b32.xlu1 %v1888_v48, %s1664_s14 }
 0x191   : > { %758 = vrot.lane.b32.xlu0 %v1895_v52, %s1664_s14  ;;  %818 = vrot.lane.b32.xlu1 %v1888_v48, %s1665_s15 }
 0x195   : > { %820 = vrot.lane.b32.xlu0 %v1895_v52, %s1665_s15  ;;  %855 = vrot.lane.b32.xlu1 %v1888_v48, %s1666_s16 }
 0x199   : > { %857 = vrot.lane.b32.xlu0 %v1895_v52, %s1666_s16  ;;  %892 = vrot.lane.b32.xlu1 %v1888_v48, %s1668_s17 }
 0x19d   : > { %894 = vrot.lane.b32.xlu0 %v1895_v52, %s1668_s17  ;;  %929 = vrot.lane.b32.xlu1 %v1888_v48, %s1670_s18 }
 0x1a1   : > { %931 = vrot.lane.b32.xlu0 %v1895_v52, %s1670_s18  ;;  %654 = vrot.lane.b32.xlu1 %v1926_v54, %s1662_s12 }
 0x1a5   : > { %656 = vrot.lane.b32.xlu0 %v1933_v56, %s1662_s12  ;;  %686 = vrot.lane.b32.xlu1 %v1926_v54, %s1661_s11 }
 0x1a9   : > { %688 = vrot.lane.b32.xlu0 %v1933_v56, %s1661_s11  ;;  %723 = vrot.lane.b32.xlu1 %v1926_v54, %s1663_s13 }
 0x1ad   : > { %725 = vrot.lane.b32.xlu0 %v1933_v56, %s1663_s13  ;;  %760 = vrot.lane.b32.xlu1 %v1926_v54, %s1664_s14 }
 0x1b1   : > { %762 = vrot.lane.b32.xlu0 %v1933_v56, %s1664_s14  ;;  %822 = vrot.lane.b32.xlu1 %v1926_v54, %s1665_s15 }
 0x1b5   : > { %824 = vrot.lane.b32.xlu0 %v1933_v56, %s1665_s15  ;;  %859 = vrot.lane.b32.xlu1 %v1926_v54, %s1666_s16 }
 0x1b9   : > { %861 = vrot.lane.b32.xlu0 %v1933_v56, %s1666_s16  ;;  %896 = vrot.lane.b32.xlu1 %v1926_v54, %s1668_s17 }
 0x1bd   : > { %898 = vrot.lane.b32.xlu0 %v1933_v56, %s1668_s17  ;;  %933 = vrot.lane.b32.xlu1 %v1926_v54, %s1670_s18 }
 0x1c1   : > { %935 = vrot.lane.b32.xlu0 %v1933_v56, %s1670_s18  ;;  %996 = vperm.xlu1 %1572, %v992_v58  }
 0x1c5   : > { %1001 = vperm.xlu0 %1571, %v993_v60   ;;  %1012 = vperm.xlu1 %1572, %v1008_v6   ;;  %v778_v60 = vrot.slane %v1489_v41, %v1789_v12 }
 0x1c9   : > { %1017 = vperm.xlu0 %1571, %v1009_v61   ;;  %1393 = vperm.xlu1 %1572, %v1389_v62  }
 0x1cd   : > { %1398 = vperm.xlu0 %1571, %v1390_v7  }
 0x1f3   : > { %v651_v63 = vpop.permute.xlu1 %650 }
 0x1f7   : > { %v653_v3 = vpop.permute.xlu0 %652  ;;  %v683_v4 = vpop.permute.xlu1 %682 }
 0x1fb   : > { %v685_v5 = vpop.permute.xlu0 %684  ;;  %v720_v8 = vpop.permute.xlu1 %719 }
 0x1ff   : > { %v722_v1 = vpop.permute.xlu0 %721  ;;  %v757_v9 = vpop.permute.xlu1 %756 }
 0x203   : > { %v1977_v13 = vpop.permute.xlu0 %758  ;;  %v1979_v14 = vpop.permute.xlu1 %818 }
 0x207   : > { %v1981_v15 = vpop.permute.xlu0 %820  ;;  %v1983_v16 = vpop.permute.xlu1 %855 }
 0x20b   : > { %v1985_v17 = vpop.permute.xlu0 %857  ;;  %v1987_v18 = vpop.permute.xlu1 %892 }
 0x20f   : > { %v1989_v19 = vpop.permute.xlu0 %894  ;;  %v1991_v20 = vpop.permute.xlu1 %929 }
 0x213   : > { %v1993_v21 = vpop.permute.xlu0 %931  ;;  %v655_v22 = vpop.permute.xlu1 %654 }
 0x214   : > { %v658_v37 = vsel %vm314_vm1, %v651_v63, %v655_v22  ;;  %v660_v38 = vsel %vm314_vm1, %v655_v22, %v651_v63 }
 0x215   : > { %v2044_v57 = vmul.f32 %v667_v33, %v660_v38  ;;  %v2046_v58 = vmul.f32 %v671_v34, %v658_v37 }
 0x217   : > { %v657_v26 = vpop.permute.xlu0 %656  ;;  %v687_v29 = vpop.permute.xlu1 %686 }
 0x218   : > { %v690_v31 = vsel %vm337_vm0, %v683_v4, %v687_v29  ;;  %v692_v32 = vsel %vm337_vm0, %v687_v29, %v683_v4  ;;  %v659_v42 = vsel %vm314_vm1, %v653_v3, %v657_v26  ;;  %v661_v43 = vsel %vm314_vm1, %v657_v26, %v653_v3  ;;  %v1491_v26 = vld [vmem:[%s2349_s6 + $0xa] sm:$0x3] }
 0x219   : > { %v2032_v44 = vmul.f32 %v700_v27, %v692_v32  ;;  %v2034_v46 = vmul.f32 %v704_v28, %v690_v31  ;;  %v2050_v6 = vmul.f32 %v667_v33, %v661_v43  ;;  %v2052_v61 = vmul.f32 %v671_v34, %v659_v42  ;;  %v1492_v43 = vld [vmem:[%s2349_s6 + $0xc] sm:$0x3] }
 0x21a   : > { %v2094_v32 = vmul.f32 %v2016_v35, %v1888_v48  ;;  %v836_v38 = vrot.slane %v1491_v26, %v1787_v11 }
 0x21b   : > { %v689_v47 = vpop.permute.xlu0 %688  ;;  %v724_v49 = vpop.permute.xlu1 %723  ;;  %v715_v63 = vmax.f32 %v2044_v57, %v2032_v44  ;;  %v716_v3 = vmax.f32 %v2046_v58, %v2034_v46 }
 0x21c   : > { %v691_v50 = vsel %vm337_vm0, %v685_v5, %v689_v47  ;;  %v693_v51 = vsel %vm337_vm0, %v689_v47, %v685_v5  ;;  %v727_v53 = vsel %vm361_vm2, %v720_v8, %v724_v49  ;;  %v729_v55 = vsel %vm361_vm2, %v724_v49, %v720_v8 }
 0x21d   : > { %v2054_v62 = vmul.f32 %v700_v27, %v693_v51  ;;  %v2056_v7 = vmul.f32 %v704_v28, %v691_v50  ;;  %v2062_v4 = vmul.f32 %v737_v39, %v729_v55  ;;  %v2064_v5 = vmul.f32 %v741_v40, %v727_v53  ;;  %v1493_v53 = vld [vmem:[%s2349_s6 + $0xe] sm:$0x3] }
 0x21f   : > { %v726_v8 = vpop.permute.xlu0 %725  ;;  %v761_v0 = vpop.permute.xlu1 %760  ;;  %v718_v31 = vmax.f32 %v2052_v61, %v2056_v7  ;;  %v752_v33 = vmax.f32 %v715_v63, %v2062_v4  ;;  %v753_v34 = vmax.f32 %v716_v3, %v2064_v5  ;;  %v2127_v63 = vmul.f32 %v803_v36, %v1933_v56 }
 0x220   : > { %v728_v22 = vsel %vm361_vm2, %v722_v1, %v726_v8  ;;  %v730_v23 = vsel %vm361_vm2, %v726_v8, %v722_v1  ;;  %v764_v24 = vsel %vm385_vm3, %v757_v9, %v761_v0  ;;  %v766_v25 = vsel %vm385_vm3, %v761_v0, %v757_v9 }
 0x221   : > { %v2077_v27 = vmul.f32 %v737_v39, %v730_v23  ;;  %v2079_v28 = vmul.f32 %v741_v40, %v728_v22  ;;  %v2081_v29 = vmul.f32 %v774_v59, %v766_v25  ;;  %v2083_v30 = vmul.f32 %v778_v60, %v764_v24 }
 0x222   : > { %v717_v1 = vmax.f32 %v2050_v6, %v2054_v62  ;;  %v2090_v9 = vmul.f32 %v803_v36, %v1926_v54  ;;  %v840_v39 = vrot.slane %v1491_v26, %v1789_v12  ;;  %v873_v0 = vrot.slane %v1492_v43, %v1787_v11 }
 0x223   : > { %v763_v37 = vpop.permute.xlu0 %762  ;;  %v823_v40 = vpop.permute.xlu1 %822  ;;  %v755_v42 = vmax.f32 %v718_v31, %v2079_v28  ;;  %v789_v47 = vmax.f32 %v752_v33, %v2081_v29  ;;  %v790_v49 = vmax.f32 %v753_v34, %v2083_v30  ;;  %v877_v22 = vrot.slane %v1492_v43, %v1789_v12  ;;  %v1494_v34 = vld [vmem:[%s2349_s6 + $0x10] sm:$0x3] }
 0x224   : > { %v754_v41 = vmax.f32 %v717_v1, %v2077_v27  ;;  %v765_v54 = vsel %vm385_vm3, %v1977_v13, %v763_v37  ;;  %v767_v48 = vsel %vm385_vm3, %v763_v37, %v1977_v13  ;;  %v826_v13 = vsel %vm426_vm4, %v1979_v14, %v823_v40 }
 0x225   : > { %v2113_v50 = vmul.f32 %v774_v59, %v767_v48  ;;  %v2115_v51 = vmul.f32 %v778_v60, %v765_v54  ;;  %v828_v55 = vsel %vm426_vm4, %v823_v40, %v1979_v14  ;;  %v2131_v59 = vmul.f32 %v2016_v35, %v1895_v52 }
 0x226   : > { %v910_v52 = vrot.slane %v1493_v53, %v1787_v11  ;;  %v914_v35 = vrot.slane %v1493_v53, %v1789_v12  ;;  %v815_v36 = vmax.f32 %v790_v49, %v2090_v9  ;;  %v814_v24 = vmax.f32 %v789_v47, %v2094_v32 }
 0x227   : > { %v791_v60 = vmax.f32 %v754_v41, %v2113_v50  ;;  %v792_v3 = vmax.f32 %v755_v42, %v2115_v51  ;;  %v825_v8 = vpop.permute.xlu0 %824  ;;  %v860_v23 = vpop.permute.xlu1 %859  ;;  %v2147_v25 = vmul.f32 %v836_v38, %v826_v13  ;;  %v2149_v26 = vmul.f32 %v840_v39, %v828_v55 }
 0x228   : > { %v827_v14 = vsel %vm426_vm4, %v1981_v15, %v825_v8  ;;  %v829_v56 = vsel %vm426_vm4, %v825_v8, %v1981_v15  ;;  %v863_v15 = vsel %vm450_vm5, %v1983_v16, %v860_v23  ;;  %v865_v33 = vsel %vm450_vm5, %v860_v23, %v1983_v16 }
 0x229   : > { %v817_v1 = vmax.f32 %v792_v3, %v2127_v63  ;;  %v816_v31 = vmax.f32 %v791_v60, %v2131_v59  ;;  %v2162_v37 = vmul.f32 %v836_v38, %v827_v14  ;;  %v2164_v40 = vmul.f32 %v840_v39, %v829_v56 }
 0x22a   : > { %v2166_v41 = vmul.f32 %v873_v0, %v863_v15  ;;  %v2168_v42 = vmul.f32 %v877_v22, %v865_v33  ;;  %v947_v47 = vrot.slane %v1494_v34, %v1787_v11  ;;  %v951_v49 = vrot.slane %v1494_v34, %v1789_v12 }
 0x22b   : > { %v862_v54 = vpop.permute.xlu0 %861  ;;  %v897_v48 = vpop.permute.xlu1 %896  ;;  %v851_v53 = vmax.f32 %v814_v24, %v2147_v25  ;;  %v852_v13 = vmax.f32 %v815_v36, %v2149_v26  ;;  %v854_v3 = vmax.f32 %v817_v1, %v2164_v40 }
 0x22c   : > { %v864_v43 = vsel %vm450_vm5, %v1985_v17, %v862_v54  ;;  %v866_v16 = vsel %vm450_vm5, %v862_v54, %v1985_v17  ;;  %v900_v38 = vsel %vm474_vm6, %v1987_v18, %v897_v48  ;;  %v902_v39 = vsel %vm474_vm6, %v897_v48, %v1987_v18 }
 0x22d   : > { %v2186_v55 = vmul.f32 %v910_v52, %v900_v38  ;;  %v2188_v60 = vmul.f32 %v914_v35, %v902_v39  ;;  %v853_v17 = vmax.f32 %v816_v31, %v2162_v37  ;;  %v2192_v8 = vmul.f32 %v873_v0, %v864_v43 }
 0x22e   : > { %v2194_v23 = vmul.f32 %v877_v22, %v866_v16  ;;  %v888_v12 = vmax.f32 %v851_v53, %v2166_v41  ;;  %v889_v14 = vmax.f32 %v852_v13, %v2168_v42 }
 0x22f   : > { %v899_v18 = vpop.permute.xlu0 %898  ;;  %v934_v11 = vpop.permute.xlu1 %933 }
 0x230   : > { %v901_v56 = vsel %vm474_vm6, %v1989_v19, %v899_v18  ;;  %v903_v36 = vsel %vm474_vm6, %v899_v18, %v1989_v19  ;;  %v937_v22 = vsel %vm498_vm7, %v1991_v20, %v934_v11  ;;  %v939_v1 = vsel %vm498_vm7, %v934_v11, %v1991_v20 }
 0x231   : > { %v2204_v24 = vmul.f32 %v910_v52, %v901_v56  ;;  %v2206_v0 = vmul.f32 %v914_v35, %v903_v36  ;;  %v925_v31 = vmax.f32 %v888_v12, %v2186_v55  ;;  %v926_v15 = vmax.f32 %v889_v14, %v2188_v60 }
 0x232   : > { %v2216_v33 = vmul.f32 %v947_v47, %v937_v22  ;;  %v2218_v34 = vmul.f32 %v951_v49, %v939_v1  ;;  %v890_v19 = vmax.f32 %v853_v17, %v2192_v8  ;;  %v891_v52 = vmax.f32 %v854_v3, %v2194_v23 }
 0x233   : > { %v936_v35 = vpop.permute.xlu0 %935 }
 0x234   : > { %v962_v54 = vmax.f32 %v925_v31, %v2216_v33  ;;  %v963_v48 = vmax.f32 %v926_v15, %v2218_v34  ;;  %v938_v20 = vsel %vm498_vm7, %v1993_v21, %v936_v35  ;;  %v940_v43 = vsel %vm498_vm7, %v936_v35, %v1993_v21 }
 0x235   : > { %v927_v16 = vmax.f32 %v890_v19, %v2204_v24  ;;  %v928_v38 = vmax.f32 %v891_v52, %v2206_v0  ;;  %v2232_v39 = vmul.f32 %v947_v47, %v938_v20  ;;  %v2234_v53 = vmul.f32 %v951_v49, %v940_v43 }
 0x236   : > { %v966_v13 = vrot.slane %v962_v54, 4  ;;  %v972_v17 = vrot.slane %v963_v48, 4 }
 0x237   : > { %v964_v3 = vmax.f32 %v927_v16, %v2232_v39  ;;  %v965_v18 = vmax.f32 %v928_v38, %v2234_v53 }
 0x238   : > { %v967_v11 = vmax.f32 %v962_v54, %v966_v13  ;;  %v973_v12 = vmax.f32 %v963_v48, %v972_v17 }
 0x239   : > { %v978_v14 = vrot.slane %v964_v3, 4  ;;  %v984_v56 = vrot.slane %v965_v18, 4 }
 0x23a   : > { %v974_v10 = vrot.slane %v973_v12, 2  ;;  %v968_v21 = vrot.slane %v967_v11, 2 }
 0x23b   : > { %v979_v36 = vmax.f32 %v964_v3, %v978_v14  ;;  %v985_v22 = vmax.f32 %v965_v18, %v984_v56 }
 0x23c   : > { %v975_v1 = vmax.f32 %v973_v12, %v974_v10  ;;  %v969_v31 = vmax.f32 %v967_v11, %v968_v21 }
 0x23d   : > { %v980_v47 = vrot.slane %v979_v36, 2  ;;  %v986_v15 = vrot.slane %v985_v22, 2 }
 0x23e   : > { %v976_v49 = vrot.slane %v975_v1, 1  ;;  %v970_v19 = vrot.slane %v969_v31, 1 }
 0x23f   : > { %v981_v52 = vmax.f32 %v979_v36, %v980_v47  ;;  %v987_v35 = vmax.f32 %v985_v22, %v986_v15 }
 0x240   : > { %v997_v20 = vpop.permute.xlu1 %996  ;;  %v977_v43 = vmax.f32 %v975_v1, %v976_v49  ;;  %v971_v16 = vmax.f32 %v969_v31, %v970_v19 }
 0x241   : > { %v982_v38 = vrot.slane %v981_v52, 1  ;;  %v988_v54 = vrot.slane %v987_v35, 1 }
 0x242   : > { %v1004_v45 = vmul.f32 %v997_v20, %v971_v16  ;;  %v1005_v3 = vmul.f32 %v997_v20, %v977_v43 }
 0x243   : > { %v983_v48 = vmax.f32 %v981_v52, %v982_v38  ;;  %v989_v13 = vmax.f32 %v987_v35, %v988_v54 }
 0x244   : > { %v1002_v17 = vpop.permute.xlu0 %1001  ;;  %v1013_v2 = vpop.permute.xlu1 %1012 }
 0x245   : > { %v1020_v18 = vmul.f32 %v1013_v2, %v983_v48  ;;  %v1021_v12 = vmul.f32 %v1013_v2, %v989_v13  ;;  %v1006_v56 = vmul.f32 %v1002_v17, %v971_v16  ;;  %v1007_v10 = vmul.f32 %v1002_v17, %v977_v43 }
 0x247   : > { %v2238_v11 = vadd.f32 %v1020_v18, %v1004_v45  ;;  %v2240_v14 = vadd.f32 %v1021_v12, %v1005_v3 }
 0x248   : > { %v1018_v21 = vpop.permute.xlu0 %1017 }
 0x249   : > { %v1022_v36 = vmul.f32 %v1018_v21, %v983_v48  ;;  %v1023_v22 = vmul.f32 %v1018_v21, %v989_v13  ;;  %v1033_v1 = vsub.f32 %v2046_v58, %v2240_v14  ;;  %v1032_v31 = vsub.f32 %v2044_v57, %v2238_v11 }
 0x24a   : > { %v1057_v47 = vsub.f32 %v2034_v46, %v2240_v14  ;;  %v1056_v45 = vsub.f32 %v2032_v44, %v2238_v11  ;;  %v1081_v2 = vsub.f32 %v2064_v5, %v2240_v14  ;;  %v1080_v15 = vsub.f32 %v2062_v4, %v2238_v11 }
 0x24b   : > { %v2254_v49 = vadd.f32 %v1022_v36, %v1006_v56  ;;  %v2256_v19 = vadd.f32 %v1023_v22, %v1007_v10  ;;  %v1037_v58 = vmul.f32 20.0, %v1033_v1  ;;  %v1036_v52 = vmul.f32 20.0, %v1032_v31 }
 0x24c   : > { %v1061_v35 = vmul.f32 20.0, %v1057_v47  ;;  %v1060_v57 = vmul.f32 20.0, %v1056_v45  ;;  %v1085_v20 = vmul.f32 20.0, %v1081_v2  ;;  %v1084_v43 = vmul.f32 20.0, %v1080_v15 }
 0x24d   : > { %v1035_v46 = vsub.f32 %v2052_v61, %v2256_v19  ;;  %v1042_v44 = vmul.f32 1.442695, %v1037_v58  ;;  %v1034_v5 = vsub.f32 %v2050_v6, %v2254_v49  ;;  %v1040_v16 = vmul.f32 1.442695, %v1036_v52 }
 0x24e   : > { %v1059_v4 = vsub.f32 %v2056_v7, %v2256_v19  ;;  %v1066_v38 = vmul.f32 1.442695, %v1061_v35  ;;  %v1058_v54 = vsub.f32 %v2054_v62, %v2254_v49  ;;  %v1064_v48 = vmul.f32 1.442695, %v1060_v57 }
 0x24f   : > { %v1039_v13 = vmul.f32 20.0, %v1035_v46  ;;  %1573 = vpow2.f32 %v1042_v44  ;;  %v1038_v17 = vmul.f32 20.0, %v1034_v5  ;;  %v1083_v3 = vsub.f32 %v2079_v28, %v2256_v19 }
 0x250   : > { %1575 = vpow2.f32 %v1040_v16  ;;  %v1063_v61 = vmul.f32 20.0, %v1059_v4  ;;  %v1062_v18 = vmul.f32 20.0, %v1058_v54  ;;  %v1090_v12 = vmul.f32 1.442695, %v1085_v20 }
 0x251   : > { %v1046_v6 = vmul.f32 1.442695, %v1039_v13  ;;  %v1044_v56 = vmul.f32 1.442695, %v1038_v17  ;;  %1577 = vpow2.f32 %v1066_v38  ;;  %v1087_v10 = vmul.f32 20.0, %v1083_v3 }
 0x252   : > { %v1070_v7 = vmul.f32 1.442695, %v1063_v61  ;;  %1579 = vpow2.f32 %v1064_v48  ;;  %v1068_v21 = vmul.f32 1.442695, %v1062_v18  ;;  %v1082_v62 = vsub.f32 %v2077_v27, %v2254_v49 }
 0x253   : > { %1581 = vpow2.f32 %v1046_v6  ;;  %v1094_v36 = vmul.f32 1.442695, %v1087_v10  ;;  %v1088_v22 = vmul.f32 1.442695, %v1084_v43  ;;  %v1105_v28 = vsub.f32 %v2083_v30, %v2240_v14 }
 0x254   : > { %1583 = vpow2.f32 %v1044_v56  ;;  %v1086_v1 = vmul.f32 20.0, %v1082_v62  ;;  %v1107_v31 = vsub.f32 %v2115_v51, %v2256_v19  ;;  %v1104_v47 = vsub.f32 %v2081_v29, %v2238_v11 }
 0x255   : > { %1585 = vpow2.f32 %v1070_v7  ;;  %v1109_v45 = vmul.f32 20.0, %v1105_v28  ;;  %v1106_v2 = vsub.f32 %v2113_v50, %v2254_v49  ;;  %v1129_v27 = vsub.f32 %v2090_v9, %v2240_v14 }
 0x256   : > { %1587 = vpow2.f32 %v1068_v21  ;;  %v1092_v15 = vmul.f32 1.442695, %v1086_v1  ;;  %v1111_v58 = vmul.f32 20.0, %v1107_v31  ;;  %v1108_v30 = vmul.f32 20.0, %v1104_v47 }
 0x257   : > { %1589 = vpow2.f32 %v1090_v12  ;;  %v1114_v52 = vmul.f32 1.442695, %v1109_v45  ;;  %v1110_v35 = vmul.f32 20.0, %v1106_v2  ;;  %v1131_v51 = vsub.f32 %v2127_v63, %v2256_v19 }
 0x258   : > { %1591 = vpow2.f32 %v1094_v36  ;;  %v1118_v29 = vmul.f32 1.442695, %v1111_v58  ;;  %v1112_v57 = vmul.f32 1.442695, %v1108_v30  ;;  %v1133_v20 = vmul.f32 20.0, %v1129_v27 }
 0x259   : > { %v1574_v43 = vpop.eup %1573  ;;  %1593 = vpow2.f32 %v1088_v22  ;;  %v1116_v50 = vmul.f32 1.442695, %v1110_v35  ;;  %v1135_v46 = vmul.f32 20.0, %v1131_v51  ;;  %v1128_v9 = vsub.f32 %v2094_v32, %v2238_v11 }
 0x25a   : > { %v1576_v44 = vpop.eup %1575  ;;  %1595 = vpow2.f32 %v1092_v15  ;;  %v1138_v5 = vmul.f32 1.442695, %v1133_v20  ;;  %v1130_v16 = vsub.f32 %v2131_v59, %v2254_v49  ;;  %v1153_v63 = vsub.f32 %v2149_v26, %v2240_v14 }
 0x25b   : > { %v1578_v4 = vpop.eup %1577  ;;  %1597 = vpow2.f32 %v1114_v52  ;;  %v1142_v38 = vmul.f32 1.442695, %v1135_v46  ;;  %v1132_v54 = vmul.f32 20.0, %v1128_v9  ;;  %v1155_v48 = vsub.f32 %v2164_v40, %v2256_v19 }
 0x25c   : > { %v1580_v13 = vpop.eup %1579  ;;  %1599 = vpow2.f32 %v1118_v29  ;;  %v1134_v17 = vmul.f32 20.0, %v1130_v16  ;;  %v1157_v32 = vmul.f32 20.0, %v1153_v63  ;;  %v1152_v3 = vsub.f32 %v2147_v25, %v2238_v11 }
 0x25d   : > { %v1582_v61 = vpop.eup %1581  ;;  %1601 = vpow2.f32 %v1112_v57  ;;  %v1136_v59 = vmul.f32 1.442695, %v1132_v54  ;;  %v1159_v18 = vmul.f32 20.0, %v1155_v48  ;;  %v1154_v26 = vsub.f32 %v2162_v37, %v2254_v49 }
 0x25e   : > { %v1584_v12 = vpop.eup %1583  ;;  %v1517_v6 = vpack.c.bf16 %v1582_v61, %v1574_v43  ;;  %1603 = vpow2.f32 %v1116_v50  ;;  %v1140_v56 = vmul.f32 1.442695, %v1134_v17  ;;  %v1162_v10 = vmul.f32 1.442695, %v1157_v32 }
 0x25f   : > { %v1586_v40 = vpop.eup %1585  ;;  %v1519_v7 = vpack.c.bf16 %v1584_v12, %v1576_v44  ;;  %1605 = vpow2.f32 %v1138_v5  ;;  %v1166_v21 = vmul.f32 1.442695, %v1159_v18  ;;  %v1156_v62 = vmul.f32 20.0, %v1152_v3 }
 0x260   : > { %v1588_v36 = vpop.eup %1587  ;;  %1518 = vmatprep.subr.bf16.mxu1 %v1517_v6  ;;  %v1521_v25 = vpack.c.bf16 %v1586_v40, %v1578_v4  ;;  %1607 = vpow2.f32 %v1142_v38  ;;  %v1158_v22 = vmul.f32 20.0, %v1154_v26  ;;  %v1177_v28 = vsub.f32 %v2168_v42, %v2240_v14 }
 0x261   : > { %v1590_v1 = vpop.eup %1589  ;;  %1520 = vmatpush1.bf16.msra.mxu1 %v1519_v7  ;;  %v1523_v37 = vpack.c.bf16 %v1588_v36, %v1580_v13  ;;  %1609 = vpow2.f32 %v1136_v59  ;;  %v1160_v31 = vmul.f32 1.442695, %v1156_v62  ;;  %v1179_v47 = vsub.f32 %v2194_v23, %v2256_v19 }
 0x262   : > { %v1592_v45 = vpop.eup %1591  ;;  %1522 = vmatprep.subr.bf16.mxu1 %v1521_v25  ;;  %1611 = vpow2.f32 %v1140_v56  ;;  %v1164_v2 = vmul.f32 1.442695, %v1158_v22  ;;  %v1181_v27 = vmul.f32 20.0, %v1177_v28  ;;  %v1176_v15 = vsub.f32 %v2166_v41, %v2238_v11 }
 0x263   : > { %v1594_v58 = vpop.eup %1593  ;;  %v1525_v30 = vpack.c.bf16 %v1592_v45, %v1590_v1  ;;  %1613 = vpow2.f32 %v1162_v10  ;;  %v1183_v42 = vmul.f32 20.0, %v1179_v47  ;;  %v1178_v52 = vsub.f32 %v2192_v8, %v2254_v49 }
 0x264   : > { %v1596_v35 = vpop.eup %1595  ;;  %1615 = vpow2.f32 %v1166_v21  ;;  %v1186_v51 = vmul.f32 1.442695, %v1181_v27  ;;  %v1180_v29 = vmul.f32 20.0, %v1176_v15  ;;  %v1201_v23 = vsub.f32 %v2188_v60, %v2240_v14 }
 0x265   : > { %v1598_v57 = vpop.eup %1597  ;;  %1524 = vmatpush1.bf16.msra.mxu1 %v1523_v37  ;;  %1617 = vpow2.f32 %v1160_v31  ;;  %v1190_v20 = vmul.f32 1.442695, %v1183_v42  ;;  %v1182_v43 = vmul.f32 20.0, %v1178_v52  ;;  %v1527_v50 = vpack.c.bf16 %v1596_v35, %v1594_v58 }
 0x266   : > { %v1600_v41 = vpop.eup %1599  ;;  %1526 = vmatprep.subr.bf16.mxu1 %v1525_v30  ;;  %1619 = vpow2.f32 %v1164_v2  ;;  %v1203_v46 = vsub.f32 %v2206_v0, %v2256_v19  ;;  %v1205_v8 = vmul.f32 20.0, %v1201_v23  ;;  %v1184_v44 = vmul.f32 1.442695, %v1180_v29 }
 0x267   : > { %v1602_v9 = vpop.eup %1601  ;;  %1621 = vpow2.f32 %v1186_v51  ;;  %v1188_v5 = vmul.f32 1.442695, %v1182_v43  ;;  %v1200_v60 = vsub.f32 %v2186_v55, %v2238_v11  ;;  %v1529_v63 = vpack.c.bf16 %v1600_v41, %v1598_v57 }
 0x268   : > { %v1604_v16 = vpop.eup %1603  ;;  %1623 = vpow2.f32 %v1190_v20  ;;  %v1207_v4 = vmul.f32 20.0, %v1203_v46  ;;  %v1202_v38 = vsub.f32 %v2204_v24, %v2254_v49  ;;  %v1210_v13 = vmul.f32 1.442695, %v1205_v8  ;;  %v1247_v46 = vld [vmem:[%s2346_s3 + $0x18] sm:$0xff]  ;;  %v1246_v8 = vld [vmem:[%s2346_s3 + $0x10] sm:$0xff] }
 0x269   : > { %v1606_v54 = vpop.eup %1605  ;;  %1528 = vmatpush1.bf16.msra.mxu1 %v1527_v50  ;;  %v1531_v48 = vpack.c.bf16 %v1604_v16, %v1602_v9  ;;  %v1204_v0 = vmul.f32 20.0, %v1200_v60  ;;  %v1225_v17 = vsub.f32 %v2218_v34, %v2240_v14  ;;  %1625 = vpow2.f32 %v1188_v5  ;;  %v1244_v50 = vld [vmem:[%s2346_s3] sm:$0xff] }
 0x26a   : > { %v1608_v32 = vpop.eup %1607  ;;  %1530 = vmatprep.subr.bf16.mxu1 %v1529_v63  ;;  %v1214_v3 = vmul.f32 1.442695, %v1207_v4  ;;  %v1206_v55 = vmul.f32 20.0, %v1202_v38  ;;  %v1227_v61 = vsub.f32 %v2234_v53, %v2256_v19  ;;  %1627 = vpow2.f32 %v1184_v44 }
 0x26b   : > { %v1610_v59 = vpop.eup %1609  ;;  %v1533_v18 = vpack.c.bf16 %v1608_v32, %v1606_v54  ;;  %v1208_v24 = vmul.f32 1.442695, %v1204_v0  ;;  %v1229_v26 = vmul.f32 20.0, %v1225_v17  ;;  %v1224_v34 = vsub.f32 %v2216_v33, %v2238_v11 }
 0x26c   : > { %v1612_v12 = vpop.eup %1611  ;;  %1629 = vpow2.f32 %v1214_v3  ;;  %v1212_v6 = vmul.f32 1.442695, %v1206_v55  ;;  %v1231_v56 = vmul.f32 20.0, %v1227_v61  ;;  %v1226_v53 = vsub.f32 %v2232_v39, %v2254_v49 }
 0x26d   : > { %v1614_v10 = vpop.eup %1613  ;;  %1532 = vmatpush1.bf16.msra.mxu1 %v1531_v48  ;;  %v1535_v40 = vpack.c.bf16 %v1612_v12, %v1610_v59  ;;  %1631 = vpow2.f32 %v1210_v13  ;;  %v1234_v7 = vmul.f32 1.442695, %v1229_v26  ;;  %v1228_v36 = vmul.f32 20.0, %v1224_v34 }
 0x26e   : > { %v1616_v21 = vpop.eup %1615  ;;  %1534 = vmatprep.subr.bf16.mxu1 %v1533_v18  ;;  %1633 = vpow2.f32 %v1212_v6  ;;  %v1238_v62 = vmul.f32 1.442695, %v1231_v56  ;;  %v1230_v22 = vmul.f32 20.0, %v1226_v53  ;;  %v1394_v18 = vpop.permute.xlu1 %1393 }
 0x26f   : > { %v1618_v25 = vpop.eup %1617  ;;  %1635 = vpow2.f32 %v1208_v24  ;;  %v1537_v1 = vpack.c.bf16 %v1616_v21, %v1614_v10  ;;  %v1232_v33 = vmul.f32 1.442695, %v1228_v36  ;;  %v2358_v10 = vld [vmem:[#allocation4_spill] sm:$0xff]  ;;  %v1399_v53 = vpop.permute.xlu0 %1398  ;;  %v2359_v36 = vld [vmem:[#allocation5_spill] sm:$0xff] }
 0x270   : > { %v1620_v28 = vpop.eup %1619  ;;  %1637 = vpow2.f32 %v1238_v62  ;;  %v1236_v31 = vmul.f32 1.442695, %v1230_v22 }
 0x271   : > { %v1622_v37 = vpop.eup %1621  ;;  %1536 = vmatpush1.bf16.msra.mxu1 %v1535_v40  ;;  %1639 = vpow2.f32 %v1234_v7  ;;  %v1539_v45 = vpack.c.bf16 %v1620_v28, %v1618_v25 }
 0x272   : > { %v1624_v47 = vpop.eup %1623  ;;  %1538 = vmatprep.subr.bf16.mxu1 %v1537_v1  ;;  %1641 = vpow2.f32 %v1236_v31 }
 0x273   : > { %v1626_v39 = vpop.eup %1625  ;;  %v1541_v2 = vpack.c.bf16 %v1624_v47, %v1622_v37  ;;  %1643 = vpow2.f32 %v1232_v33 }
 0x274   : > { %v1628_v27 = vpop.eup %1627 }
 0x275   : > { %1540 = vmatpush1.bf16.msra.mxu1 %v1539_v45  ;;  %v1543_v30 = vpack.c.bf16 %v1626_v39, %v1628_v27 }
 0x276   : > { %v1630_v15 = vpop.eup %1629  ;;  %1542 = vmatprep.subr.bf16.mxu1 %v1541_v2 }
 0x277   : > { %v1632_v58 = vpop.eup %1631 }
 0x278   : > { %v1634_v42 = vpop.eup %1633  ;;  %v1545_v52 = vpack.c.bf16 %v1630_v15, %v1632_v58 }
 0x279   : > { %v1636_v35 = vpop.eup %1635  ;;  %1544 = vmatpush1.bf16.msra.mxu1 %v1543_v30 }
 0x27a   : > { %v1638_v51 = vpop.eup %1637  ;;  %1546 = vmatprep.subr.bf16.mxu1 %v1545_v52  ;;  %v1547_v23 = vpack.c.bf16 %v1634_v42, %v1636_v35 }
 0x27b   : > { %v1640_v29 = vpop.eup %1639 }
 0x27c   : > { %v1549_v57 = vpack.c.bf16 %v1638_v51, %v1640_v29  ;;  %v1642_v20 = vpop.eup %1641 }
 0x27d   : > { %1548 = vmatpush1.bf16.msra.mxu1 %v1547_v23  ;;  %v1644_v43 = vpop.eup %1643 }
 0x27e   : > { %1550 = vmatprep.subr.bf16.mxu1 %v1549_v57  ;;  %v1551_v41 = vpack.c.bf16 %v1642_v20, %v1644_v43 }
 0x281   : > { %1552 = vmatpush1.bf16.msra.mxu1 %v1551_v41 }
 0x284   : > { %1356 = vmatmul.mubr.f32.vlgmr.msra.gmra.mrb[0].mxu1 %v1244_v50 }
 0x285   : > { %1496 = vmatprep.mubr.msk.f32.mxu1 %vm1284_vm9, %v1247_v46 }
 0x288   : > { %1362 = vmatmul.mubr.f32.gmra.mrb[2].mxu1 %v1246_v8 }
 0x357   : > { %v1357_v9 = vpop.f32.mrb[0].mxu1 }
 0x358   : > { %v1368_v44 = vmax.f32 %v1357_v9, 1e-30  ;;  %v1359_v5 = vpop.f32.mrb[1].mxu1 }
 0x359   : > { %v1369_v60 = vmax.f32 %v1359_v5, 1e-30 }
 0x35a   : > { %1645 = vlog2.f32 %v1368_v44 }
 0x35b   : > { %1647 = vlog2.f32 %v1369_v60  ;;  %v1363_v16 = vpop.f32.mrb[2].mxu1 }
 0x35c   : > { %v1370_v63 = vmax.f32 %v1363_v16, 1e-30  ;;  %v1365_v4 = vpop.f32.mrb[3].mxu1 }
 0x35d   : > { %v1371_v38 = vmax.f32 %v1365_v4, 1e-30 }
 0x35e   : > { %1649 = vlog2.f32 %v1370_v63 }
 0x35f   : > { %1651 = vlog2.f32 %v1371_v38 }
 0x364   : > { %v1646_v54 = vpop.eup %1645 }
 0x365   : > { %v1648_v48 = vpop.eup %1647  ;;  %v1373_v13 = vmul.f32 0.6931472, %v1646_v54 }
 0x366   : > { %v1375_v0 = vmul.f32 0.6931472, %v1648_v48 }
 0x367   : > { %v1381_v17 = vmul.f32 0.05, %v1373_v13 }
 0x368   : > { %v1650_v32 = vpop.eup %1649  ;;  %v1382_v3 = vmul.f32 0.05, %v1375_v0 }
 0x369   : > { %v1652_v55 = vpop.eup %1651  ;;  %v1385_v61 = vadd.f32 %v1381_v17, %v2238_v11  ;;  %v1377_v59 = vmul.f32 0.6931472, %v1650_v32 }
 0x36a   : > { %v1386_v24 = vadd.f32 %v1382_v3, %v2240_v14  ;;  %v1379_v26 = vmul.f32 0.6931472, %v1652_v55 }
 0x36b   : > { %v1401_v12 = vadd.f32 %v1394_v18, %v1385_v61  ;;  %v1383_v6 = vmul.f32 0.05, %v1377_v59 }
 0x36c   : > { %v1402_v56 = vadd.f32 %v1394_v18, %v1386_v24  ;;  %v1384_v34 = vmul.f32 0.05, %v1379_v26 }
 0x36d   : > { %v1405_v40 = vmul.f32 %v1401_v12, %v2358_v10  ;;  %v1387_v7 = vadd.f32 %v1383_v6, %v2254_v49 }
 0x36e   : > { %v1406_v11 = vmul.f32 %v1402_v56, %v2358_v10  ;;  %v1388_v21 = vadd.f32 %v1384_v34, %v2256_v19 }
 0x36f   : > { %1409 = vst [vmem:[%s305_s10] sm:$0xff] %v1405_v40  ;;  %v1403_v14 = vadd.f32 %v1399_v53, %v1387_v7 }
 0x370   : > { %1410 = vst [vmem:[%s305_s10 + $0x8] sm:$0xff] %v1406_v11  ;;  %v1404_v62 = vadd.f32 %v1399_v53, %v1388_v21 }
 0x371   : > { %v1407_v25 = vmul.f32 %v1403_v14, %v2359_v36 }
 0x372   : > { %v1408_v22 = vmul.f32 %v1404_v62, %v2359_v36 }
 0x373   : > { %1411 = vst [vmem:[%s305_s10 + $0x10] sm:$0xff] %v1407_v25 }
 0x374   : > { %1412 = vst [vmem:[%s305_s10 + $0x18] sm:$0xff] %v1408_v22 }
 0x375 PF: > { %s18_s27 = sadd.s32 1, %s1659_s27  }
 0x376   : > { %p15_p4 = scmp.ge.s32.totalorder %s18_s27, 4  }
 0x378   :  { %17 = sbr.rel (!%p15_p4) target bundleno = 1 (0x1), region = 98 }

</bundles_post_ra>
